<compile_context>
chip_gen: v7x
topology: tpu7x:2x2x1
jax: 0.10.0
libtpu: 0.0.40
codegen_flags: <defaults>
</compile_context>

<pallas_src>
import jax
import jax.numpy as jnp
from jax.experimental import pallas as pl
from jax.experimental.pallas import tpu as pltpu


def _device_kind():
    try:
        return jax.devices()[0].device_kind.lower()
    except Exception:
        return ""


def _invariant_spec(shape):
    """Grid-invariant (weight/bias) block: constant index_map. Single-buffer it
    so a block that is only DMA'd once does not pay 2x VMEM (matters on v7x's
    64 MiB VMEM once inner_dim/chan_out grow; harmless elsewhere)."""
    idx = lambda n, j: (0,) * len(shape)
    if hasattr(pl, "Buffered"):
        try:
            return pl.BlockSpec(shape, idx, pipeline_mode=pl.Buffered(1))
        except TypeError:
            pass
    return pl.BlockSpec(shape, idx)


def _choose_tiles(HW, N, inner_dim, chan_out, is_v7x):
    """Pick (n_blk images per grid step, t_hw spatial lanes per step).

    Lane budget keeps the f32 (inner_dim, t_hw) intermediate to a few MiB;
    tighter on v7x (64 MiB physical VMEM vs 128 MiB on v5e/v6e)."""
    budget = (1 << 20) if is_v7x else (2 << 20)
    cap = budget // max(inner_dim, chan_out, 1)
    cap = max(512, min(2048 if is_v7x else 4096, cap))
    target = min(cap, 1024)

    if HW <= target:
        # Small spatial extent: take the whole H*W plane per block (legal even
        # when not a multiple of 128 -- the block spans the full dim) and pack
        # several images per grid step to amortize per-step overhead.
        n_blk = max(1, min(N, target // max(HW, 1)))
        # Keep >=2 grid steps for the two v7x TensorCores when the per-step
        # tile is already big enough to amortize overhead.
        if n_blk >= N and N > 1 and (N // 2) * HW >= 1024:
            n_blk = -(-N // 2)
        return n_blk, HW

    # Large spatial extent: one image per step, multiple-of-128 lane tile.
    t = min(cap, HW)
    if N == 1:
        t = min(t, -(-HW // 2))          # >= 2 spatial steps -> both TCs busy
    t_hw = max(128, (t // 128) * 128)
    return 1, t_hw


def conv_mlp_forward(x_nchw, params, *, matmul_dtype=jnp.bfloat16,
                     ew_dtype=None, out_dtype=None):
    """x_nchw: (N, C, H, W). Returns (N, chan_out, H, W). Eval-mode BN.

    matmul_dtype: MXU operand dtype (default bf16; pass jnp.float32 to opt out).
                  Accumulation is always f32.
    ew_dtype:     dtype for the bias-add + ReLU on the (inner, t_hw) tile.
                  Default: bf16 on v6e/v7x, f32 on v5e / when matmul_dtype=f32.
    out_dtype:    output dtype (default: input dtype). Passing bf16 halves the
                  dominant HBM write stream -- numerics/interface change.
    """
    w1, b1 = params["w1"], params["b1"]              # (inner, C), (inner,)
    w2, b2 = params["w2"], params["b2"]              # (co, inner), (co,)
    gamma, beta = params["gamma"], params["beta"]
    mean, var, eps = params["running_mean"], params["running_var"], params["eps"]

    N, C, H, W = x_nchw.shape
    inner_dim = w1.shape[0]
    chan_out = w2.shape[0]
    HW = H * W

    kind = _device_kind()
    is_v7x = ("v7" in kind) or ("tpu7" in kind)
    if matmul_dtype is None:
        matmul_dtype = jnp.float32
    if ew_dtype is None:
        if jnp.dtype(matmul_dtype) == jnp.dtype(jnp.float32) or "v5" in kind:
            ew_dtype = jnp.float32          # v5e VPU has no bf16 path
        else:
            ew_dtype = jnp.bfloat16
    if out_dtype is None:
        out_dtype = x_nchw.dtype

    # Fold conv1 bias + eval-mode BatchNorm. Scale goes INTO w1 (f32 fold,
    # before any bf16 cast); only the shift remains as a per-channel bias.
    inv_std = 1.0 / jnp.sqrt(var.astype(jnp.float32) + eps)
    bn_scale = gamma.astype(jnp.float32) * inv_std                      # (inner,)
    w1_fold = (w1.astype(jnp.float32) * bn_scale[:, None]).astype(matmul_dtype)
    bn_bias = ((b1.astype(jnp.float32) - mean.astype(jnp.float32)) * bn_scale
               + beta.astype(jnp.float32))
    bias_col = bn_bias.reshape(inner_dim, 1).astype(ew_dtype)
    w2_q = w2.astype(matmul_dtype)
    b2_col = b2.reshape(chan_out, 1).astype(jnp.float32)

    # Free (contiguous) reshape -- no HBM transpose pass.
    x3 = x_nchw.reshape(N, C, HW)

    n_blk, t_hw = _choose_tiles(HW, N, inner_dim, chan_out, is_v7x)
    grid = (pl.cdiv(N, n_blk), pl.cdiv(HW, t_hw))    # boundary blocks masked

    xbytes = x_nchw.dtype.itemsize
    obytes = jnp.dtype(out_dtype).itemsize
    wbytes = jnp.dtype(matmul_dtype).itemsize
    ewbytes = jnp.dtype(ew_dtype).itemsize

    flops = 2 * N * HW * (C * inner_dim + inner_dim * chan_out)
    bytes_accessed = (N * HW * (C * xbytes + chan_out * obytes)
                      + (inner_dim * C + chan_out * inner_dim) * wbytes
                      + (inner_dim + chan_out) * 4)

    # Explicit VMEM budget (v7x: 64 MiB physical vs 128 MiB on v5e/v6e).
    vmem_est = (2 * n_blk * C * t_hw * xbytes                      # x (2x buf)
                + 2 * n_blk * chan_out * t_hw * obytes             # out (2x buf)
                + (inner_dim * C + chan_out * inner_dim) * wbytes  # weights (1x)
                + inner_dim * ewbytes + chan_out * 4               # bias vectors
                + inner_dim * t_hw * (4 + ewbytes + wbytes)        # h temporaries
                + chan_out * t_hw * 4)                             # y before cast
    phys_cap = (56 << 20) if is_v7x else (110 << 20)
    vmem_limit = int(min(max(2 * vmem_est + (2 << 20), 32 << 20), phys_cap))

    def kernel(x_ref, w1_ref, bias_ref, w2_ref, b2_ref, o_ref):
        # x_ref:    (n_blk, C, t_hw)   pixels on lanes, in-channels on sublanes
        # w1_ref:   (inner, C)         BN-scale-folded conv1 weight
        # bias_ref: (inner, 1)         folded conv1-bias + BN shift (ew dtype)
        # w2_ref:   (co, inner)        conv2 weight
        # b2_ref:   (co, 1)            f32
        # o_ref:    (n_blk, co, t_hw)
        w1v = w1_ref[...]
        w2v = w2_ref[...]
        bias = bias_ref[...]
        b2v = b2_ref[...]
        for b in range(n_blk):          # tiny static unroll over images/step
            # K = C contraction on the MXU (MXU has slack; keeps the VALU slot
            # free -- a VPU outer-product here would be the binding slot).
            x = x_ref[b].astype(w1v.dtype)
            h = jnp.dot(w1v, x, preferred_element_type=jnp.float32)
            # BN scale already folded into w1; only bias-add + ReLU, in the
            # elementwise dtype (bf16 on v6e/v7x, f32 on v5e).
            h = jnp.maximum(h.astype(bias.dtype) + bias, 0).astype(w2v.dtype)
            y = jnp.dot(w2v, h, preferred_element_type=jnp.float32) + b2v
            o_ref[b] = y.astype(o_ref.dtype)

    out3 = pl.pallas_call(
        kernel,
        out_shape=jax.ShapeDtypeStruct((N, chan_out, HW), out_dtype),
        grid_spec=pltpu.PrefetchScalarGridSpec(
            num_scalar_prefetch=0,
            grid=grid,
            in_specs=[
                pl.BlockSpec((n_blk, C, t_hw), lambda n, j: (n, 0, j)),
                _invariant_spec((inner_dim, C)),
                _invariant_spec((inner_dim, 1)),
                _invariant_spec((chan_out, inner_dim)),
                _invariant_spec((chan_out, 1)),
            ],
            out_specs=pl.BlockSpec((n_blk, chan_out, t_hw),
                                   lambda n, j: (n, 0, j)),
        ),
        compiler_params=pltpu.CompilerParams(
            dimension_semantics=("parallel", "parallel"),
            vmem_limit_bytes=vmem_limit),
        cost_estimate=pl.CostEstimate(
            flops=flops, transcendentals=0, bytes_accessed=bytes_accessed),
    )(x3, w1_fold, bias_col, w2_q, b2_col)

    return out3.reshape(N, chan_out, H, W)


def make_params(key, chan, inner_dim, chan_out, dtype=jnp.float32):
    """Deterministic synthetic params matching nn.Conv2d/BatchNorm2d shapes.
    1x1 conv weights stored in PyTorch (out, in) layout (1x1 dims squeezed)."""
    k1, k2, k3, k4, k5, k6, k7, k8 = jax.random.split(key, 8)
    bound1 = 1.0 / (chan ** 0.5)
    bound2 = 1.0 / (inner_dim ** 0.5)
    return {
        # conv1: weight (inner_dim, chan, 1, 1) -> (inner_dim, chan)
        "w1": jax.random.uniform(k1, (inner_dim, chan), dtype, -bound1, bound1),
        "b1": jax.random.uniform(k2, (inner_dim,), dtype, -bound1, bound1),
        # BatchNorm2d(inner_dim), eval mode
        "gamma": 1.0 + 0.1 * jax.random.normal(k3, (inner_dim,), dtype),
        "beta": 0.05 * jax.random.normal(k4, (inner_dim,), dtype),
        "running_mean": 0.1 * jax.random.normal(k5, (inner_dim,), dtype),
        "running_var": jnp.abs(
            1.0 + 0.1 * jax.random.normal(k6, (inner_dim,), dtype)),
        "eps": jnp.float32(1e-5),
        # conv2: weight (chan_out, inner_dim, 1, 1) -> (chan_out, inner_dim)
        "w2": jax.random.uniform(k7, (chan_out, inner_dim), dtype,
                                 -bound2, bound2),
        "b2": jax.random.uniform(k8, (chan_out,), dtype, -bound2, bound2),
    }


def conv_mlp_reference(x_nchw, params):
    """Pure-JAX NCHW reference (same eval-mode semantics)."""
    h = jnp.einsum('oc,nchw->nohw', params["w1"], x_nchw)
    h = h + params["b1"][None, :, None, None]
    inv_std = 1.0 / jnp.sqrt(params["running_var"] + params["eps"])
    h = ((h - params["running_mean"][None, :, None, None])
         * (params["gamma"] * inv_std)[None, :, None, None]
         + params["beta"][None, :, None, None])
    h = jnp.maximum(h, 0.0)
    y = jnp.einsum('oi,nihw->nohw', params["w2"], h)
    return y + params["b2"][None, :, None, None]


if __name__ == "__main__":
    key = jax.random.PRNGKey(0)
    kx, kp = jax.random.split(key)

    # Small shapes consistent with ConvMLP(chan=4, chan_out=128, inner_dim=256)
    N, chan, H, W = 2, 4, 16, 16
    inner_dim, chan_out = 256, 128

    x = jax.random.normal(kx, (N, chan, H, W), jnp.float32)
    params = make_params(kp, chan, inner_dim, chan_out)
    ref = conv_mlp_reference(x, params)

    # f32 opt-out path: near-exact eval-mode semantics.
    out_f32 = jax.block_until_ready(
        conv_mlp_forward(x, params, matmul_dtype=jnp.float32))
    assert out_f32.shape == (N, chan_out, H, W), out_f32.shape
    assert jnp.allclose(out_f32, ref, atol=1e-3, rtol=1e-3), \
        float(jnp.max(jnp.abs(out_f32 - ref)))

    # Default path: bf16 MXU operands with f32 accumulation, chip-gated bf16
    # elementwise; looser tolerance due to bf16 operand rounding.
    out = jax.block_until_ready(conv_mlp_forward(x, params))
    assert out.shape == (N, chan_out, H, W), out.shape
    assert jnp.allclose(out, ref, atol=5e-2, rtol=5e-2), \
        float(jnp.max(jnp.abs(out - ref)))

    print("KERNEL_OK")
</pallas_src>

<mosaic_0001>
module attributes {stable_mosaic.version = 11 : i64} {
  func.func @kernel(%arg0: i32, %arg1: i32, %arg2: memref<2x4x256xf32, #tpu.memory_space<vmem>>, %arg3: memref<256x4xf32, #tpu.memory_space<vmem>>, %arg4: memref<256x1xf32, #tpu.memory_space<vmem>>, %arg5: memref<128x256xf32, #tpu.memory_space<vmem>>, %arg6: memref<128x1xf32, #tpu.memory_space<vmem>>, %arg7: memref<2x128x256xf32, #tpu.memory_space<vmem>>) attributes {dimension_semantics = [#tpu.dimension_semantics<parallel>, #tpu.dimension_semantics<parallel>], iteration_bounds = array<i64: 1, 1>, scalar_prefetch = 0 : i64, scratch_operands = 0 : i64, tpu.core_type = #tpu.core_type<tc>, window_params = [{transform_indices = @transform_0, window_bounds = array<i64: 2, 4, 256>}, {pipeline_mode = #tpu.pipeline_mode<synchronous>, transform_indices = @transform_1, window_bounds = array<i64: 256, 4>}, {pipeline_mode = #tpu.pipeline_mode<synchronous>, transform_indices = @transform_2, window_bounds = array<i64: 256, 1>}, {pipeline_mode = #tpu.pipeline_mode<synchronous>, transform_indices = @transform_3, window_bounds = array<i64: 128, 256>}, {pipeline_mode = #tpu.pipeline_mode<synchronous>, transform_indices = @transform_4, window_bounds = array<i64: 128, 1>}, {transform_indices = @transform_5, window_bounds = array<i64: 2, 128, 256>}]} {
    %c0 = arith.constant 0 : index
    %c0_0 = arith.constant 0 : index
    %0 = vector.load %arg3[%c0, %c0_0] : memref<256x4xf32, #tpu.memory_space<vmem>>, vector<256x4xf32>
    %c0_1 = arith.constant 0 : index
    %c0_2 = arith.constant 0 : index
    %1 = vector.load %arg5[%c0_1, %c0_2] : memref<128x256xf32, #tpu.memory_space<vmem>>, vector<128x256xf32>
    %c0_3 = arith.constant 0 : index
    %c0_4 = arith.constant 0 : index
    %2 = vector.load %arg4[%c0_3, %c0_4] : memref<256x1xf32, #tpu.memory_space<vmem>>, vector<256x1xf32>
    %c0_5 = arith.constant 0 : index
    %c0_6 = arith.constant 0 : index
    %3 = vector.load %arg6[%c0_5, %c0_6] : memref<128x1xf32, #tpu.memory_space<vmem>>, vector<128x1xf32>
    %c0_7 = arith.constant 0 : index
    %c0_8 = arith.constant 0 : index
    %c0_9 = arith.constant 0 : index
    %4 = vector.load %arg2[%c0_7, %c0_8, %c0_9] : memref<2x4x256xf32, #tpu.memory_space<vmem>>, vector<1x4x256xf32>
    %5 = vector.shape_cast %4 : vector<1x4x256xf32> to vector<4x256xf32>
    %cst = arith.constant dense<0.000000e+00> : vector<256x256xf32>
    %6 = tpu.matmul %0, %5, %cst {dimension_numbers = #tpu.dot_dimension_numbers<[1], [0], [0], [1], [0, 0, 1, 1], [], []>} : vector<256x4xf32>, vector<4x256xf32>, vector<256x256xf32> -> vector<256x256xf32>
    %7 = vector.broadcast %2 : vector<256x1xf32> to vector<256x256xf32>
    %8 = arith.addf %6, %7 : vector<256x256xf32>
    %cst_10 = arith.constant 0.000000e+00 : f32
    %9 = vector.broadcast %cst_10 : f32 to vector<256x256xf32>
    %10 = arith.maximumf %8, %9 : vector<256x256xf32>
    %cst_11 = arith.constant dense<0.000000e+00> : vector<128x256xf32>
    %11 = tpu.matmul %1, %10, %cst_11 {dimension_numbers = #tpu.dot_dimension_numbers<[1], [0], [0], [1], [0, 0, 1, 1], [], []>} : vector<128x256xf32>, vector<256x256xf32>, vector<128x256xf32> -> vector<128x256xf32>
    %12 = vector.broadcast %3 : vector<128x1xf32> to vector<128x256xf32>
    %13 = arith.addf %11, %12 : vector<128x256xf32>
    %c0_12 = arith.constant 0 : index
    %c0_13 = arith.constant 0 : index
    %c0_14 = arith.constant 0 : index
    %14 = vector.load %arg7[%c0_12, %c0_13, %c0_14] : memref<2x128x256xf32, #tpu.memory_space<vmem>>, vector<1x128x256xf32>
    %15 = vector.shape_cast %14 : vector<1x128x256xf32> to vector<128x256xf32>
    %16 = vector.shape_cast %13 : vector<128x256xf32> to vector<1x128x256xf32>
    tpu.vector_store %arg7[%c0_12, %c0_13, %c0_14], %16 {strides = array<i32>} : memref<2x128x256xf32, #tpu.memory_space<vmem>>, vector<1x128x256xf32>,
    %c1 = arith.constant 1 : index
    %c0_15 = arith.constant 0 : index
    %c0_16 = arith.constant 0 : index
    %17 = vector.load %arg2[%c1, %c0_15, %c0_16] : memref<2x4x256xf32, #tpu.memory_space<vmem>>, vector<1x4x256xf32>
    %18 = vector.shape_cast %17 : vector<1x4x256xf32> to vector<4x256xf32>
    %cst_17 = arith.constant dense<0.000000e+00> : vector<256x256xf32>
    %19 = tpu.matmul %0, %18, %cst_17 {dimension_numbers = #tpu.dot_dimension_numbers<[1], [0], [0], [1], [0, 0, 1, 1], [], []>} : vector<256x4xf32>, vector<4x256xf32>, vector<256x256xf32> -> vector<256x256xf32>
    %20 = vector.broadcast %2 : vector<256x1xf32> to vector<256x256xf32>
    %21 = arith.addf %19, %20 : vector<256x256xf32>
    %cst_18 = arith.constant 0.000000e+00 : f32
    %22 = vector.broadcast %cst_18 : f32 to vector<256x256xf32>
    %23 = arith.maximumf %21, %22 : vector<256x256xf32>
    %cst_19 = arith.constant dense<0.000000e+00> : vector<128x256xf32>
    %24 = tpu.matmul %1, %23, %cst_19 {dimension_numbers = #tpu.dot_dimension_numbers<[1], [0], [0], [1], [0, 0, 1, 1], [], []>} : vector<128x256xf32>, vector<256x256xf32>, vector<128x256xf32> -> vector<128x256xf32>
    %25 = vector.broadcast %3 : vector<128x1xf32> to vector<128x256xf32>
    %26 = arith.addf %24, %25 : vector<128x256xf32>
    %c1_20 = arith.constant 1 : index
    %c0_21 = arith.constant 0 : index
    %c0_22 = arith.constant 0 : index
    %27 = vector.load %arg7[%c1_20, %c0_21, %c0_22] : memref<2x128x256xf32, #tpu.memory_space<vmem>>, vector<1x128x256xf32>
    %28 = vector.shape_cast %27 : vector<1x128x256xf32> to vector<128x256xf32>
    %29 = vector.shape_cast %26 : vector<128x256xf32> to vector<1x128x256xf32>
    tpu.vector_store %arg7[%c1_20, %c0_21, %c0_22], %29 {strides = array<i32>} : memref<2x128x256xf32, #tpu.memory_space<vmem>>, vector<1x128x256xf32>,
    return
  }
  func.func @transform_0(%arg0: i32, %arg1: i32) -> (i32, i32, i32) {
    %c0_i32 = arith.constant 0 : i32
    %c0_i32_0 = arith.constant 0 : i32
    return %arg0, %c0_i32, %arg1 : i32, i32, i32
  }
  func.func @transform_1(%arg0: i32, %arg1: i32) -> (i32, i32) {
    %c0_i32 = arith.constant 0 : i32
    %c0_i32_0 = arith.constant 0 : i32
    %c0_i32_1 = arith.constant 0 : i32
    return %c0_i32, %c0_i32_0 : i32, i32
  }
  func.func @transform_2(%arg0: i32, %arg1: i32) -> (i32, i32) {
    %c0_i32 = arith.constant 0 : i32
    %c0_i32_0 = arith.constant 0 : i32
    %c0_i32_1 = arith.constant 0 : i32
    return %c0_i32, %c0_i32_0 : i32, i32
  }
  func.func @transform_3(%arg0: i32, %arg1: i32) -> (i32, i32) {
    %c0_i32 = arith.constant 0 : i32
    %c0_i32_0 = arith.constant 0 : i32
    %c0_i32_1 = arith.constant 0 : i32
    return %c0_i32, %c0_i32_0 : i32, i32
  }
  func.func @transform_4(%arg0: i32, %arg1: i32) -> (i32, i32) {
    %c0_i32 = arith.constant 0 : i32
    %c0_i32_0 = arith.constant 0 : i32
    %c0_i32_1 = arith.constant 0 : i32
    return %c0_i32, %c0_i32_0 : i32, i32
  }
  func.func @transform_5(%arg0: i32, %arg1: i32) -> (i32, i32, i32) {
    %c0_i32 = arith.constant 0 : i32
    %c0_i32_0 = arith.constant 0 : i32
    return %arg0, %c0_i32, %arg1 : i32, i32, i32
  }
}

</mosaic_0001>

<bundles_post_ra>
// kernel: tpu_custom_call.1
= control target key start
LH: loop header
LB: loop body
LE: loop exit
PB: predicated region body
PF: predicated region fallthrough
CT: control target
= control target key end

     0   :  { %vm393_vm0 = vcmask 1043456   ;;  %v2828_v2 = vmov 0.0   ;;  %vm296_vm1 = vcmask 31744   ;;  %v1770_v4 = vmov 0   ;;  %s2822_s0 = inlined_call_operand.vmem [shape: f32[2,4,256], index: 0, kind: input, shape index: {}]   ;;  %s2823_s1 = inlined_call_operand.vmem [shape: f32[256,4], index: 1, kind: input, shape index: {}]   ;;  %s2824_s2 = inlined_call_operand.vmem [shape: f32[256,1], index: 2, kind: input, shape index: {}]   ;;  %s2825_s3 = inlined_call_operand.vmem [shape: f32[128,256], index: 3, kind: input, shape index: {}]   ;;  %s2826_s4 = inlined_call_operand.vmem [shape: f32[128,1], index: 4, kind: input, shape index: {}]   ;;  %s2827_s5 = inlined_call_operand.hbm [shape: f32[2,128,256], index: 5, kind: output, shape index: {}]  }
   0x1   :  { %v133_v0 = vld [vmem:[%s2822_s0] sm:$0xff]  ;;  %462 = vmatprep.mubr.f32.mxu0 %v2828_v2  ;;  %1733 = vset.pattern.permute.xlu0 %v1770_v4  ;;  %v87_v6 = vld [vmem:[%s2824_s2 + $0x10] sm:$0xff]  ;;  %v22_v7 = vld [vmem:[%s2823_s1 + $0x8] sm:$0xff] }
   0x2   :  { %v295_v1 = vcombine.high %v133_v0, %v133_v0  ;;  %v21_v3 = vld [vmem:[%s2823_s1] sm:$0xff]  ;;  %1734 = vset.pattern.permute.xlu1 %v1770_v4  ;;  %v86_v8 = vld [vmem:[%s2824_s2 + $0x8] sm:$0xff]  ;;  %v88_v9 = vld [vmem:[%s2824_s2 + $0x18] sm:$0xff] }
   0x3   :  { %v85_v5 = vld [vmem:[%s2824_s2] sm:$0xff]  ;;  %146 = vperm.xlu1 %1734, %v87_v6   ;;  %v23_v10 = vld [vmem:[%s2823_s1 + $0x10] sm:$0xff]  ;;  %v90_v12 = vld [vmem:[%s2824_s2 + $0x28] sm:$0xff] }
   0x4   :  { %1531 = vmatprep.subr.msk.mxu0 %vm393_vm0, %v295_v1  ;;  %136 = vperm.xlu0 %1733, %v85_v5   ;;  %v89_v11 = vld [vmem:[%s2824_s2 + $0x20] sm:$0xff]  ;;  %v24_v13 = vld [vmem:[%s2823_s1 + $0x18] sm:$0xff]  ;;  %v91_v14 = vld [vmem:[%s2824_s2 + $0x30] sm:$0xff] }
   0x5   :  { %1532 = vmatpush1.msk.msra.mxu0 %vm393_vm0, %v133_v0  ;;  %v92_v15 = vld [vmem:[%s2824_s2 + $0x38] sm:$0xff]  ;;  %v25_v16 = vld [vmem:[%s2823_s1 + $0x20] sm:$0xff]  ;;  %v94_v18 = vld [vmem:[%s2824_s2 + $0x48] sm:$0xff] }
   0x6   :  { %1533 = vmatmul.mubr.msk.f32.vlgmr.msra.gmra.mrb[0].mxu0 %vm296_vm1, %v21_v3  ;;  %v93_v17 = vld [vmem:[%s2824_s2 + $0x40] sm:$0xff]  ;;  %v26_v19 = vld [vmem:[%s2823_s1 + $0x28] sm:$0xff]  ;;  %v95_v20 = vld [vmem:[%s2824_s2 + $0x50] sm:$0xff] }
   0x7   :  { %468 = vmatprep.mubr.f32.mxu0 %v2828_v2  ;;  %151 = vperm.xlu1 %1734, %v88_v9   ;;  %v96_v21 = vld [vmem:[%s2824_s2 + $0x58] sm:$0xff]  ;;  %v27_v22 = vld [vmem:[%s2823_s1 + $0x30] sm:$0xff]  ;;  %v97_v23 = vld [vmem:[%s2824_s2 + $0x60] sm:$0xff] }
   0x8   :  { %141 = vperm.xlu0 %1733, %v86_v8  }
   0xa   :  { %1534 = vmatmul.mubr.msk.f32.gmra.mrb[2].mxu0 %vm296_vm1, %v22_v7 }
   0xb   :  { %474 = vmatprep.mubr.f32.mxu0 %v2828_v2  ;;  %161 = vperm.xlu1 %1734, %v90_v12  }
   0xc   :  { %156 = vperm.xlu0 %1733, %v89_v11  }
   0xe   :  { %1535 = vmatmul.mubr.msk.f32.gmra.mrb[4].mxu0 %vm296_vm1, %v23_v10 }
   0xf   :  { %480 = vmatprep.mubr.f32.mxu0 %v2828_v2  ;;  %171 = vperm.xlu1 %1734, %v92_v15  }
  0x10   :  { %166 = vperm.xlu0 %1733, %v91_v14  }
  0x12   :  { %1536 = vmatmul.mubr.msk.f32.gmra.mrb[6].mxu0 %vm296_vm1, %v24_v13 }
  0x13   :  { %486 = vmatprep.mubr.f32.mxu0 %v2828_v2  ;;  %181 = vperm.xlu1 %1734, %v94_v18  }
  0x14   :  { %176 = vperm.xlu0 %1733, %v93_v17  }
  0x16   :  { %1537 = vmatmul.mubr.msk.f32.gmra.mrb[8].mxu0 %vm296_vm1, %v25_v16 }
  0x17   :  { %492 = vmatprep.mubr.f32.mxu0 %v2828_v2  ;;  %191 = vperm.xlu1 %1734, %v96_v21  }
  0x18   :  { %186 = vperm.xlu0 %1733, %v95_v20  }
  0x1a   :  { %1538 = vmatmul.mubr.msk.f32.gmra.mrb[10].mxu0 %vm296_vm1, %v26_v19 }
  0x1b   :  { %498 = vmatprep.mubr.f32.mxu0 %v2828_v2 }
  0x1c   :  { %10 = vsyncpa [#allocation3], 0  ;;  %v98_v24 = vld [vmem:[%s2824_s2 + $0x68] sm:$0xff]  ;;  %v28_v25 = vld [vmem:[%s2823_s1 + $0x38] sm:$0xff]  ;;  %196 = vperm.xlu0 %1733, %v97_v23  }
  0x1d   :  { %201 = vperm.xlu1 %1734, %v98_v24   ;;  %v99_v26 = vld [vmem:[%s2824_s2 + $0x70] sm:$0xff]  ;;  %v100_v27 = vld [vmem:[%s2824_s2 + $0x78] sm:$0xff]  ;;  %v1901_v28 = vld [vmem:[%s2823_s1 + $0x40] sm:$0xff] }
  0x1e   :  { %1539 = vmatmul.mubr.msk.f32.gmra.mrb[12].mxu0 %vm296_vm1, %v27_v22  ;;  %v101_v29 = vld [vmem:[%s2824_s2 + $0x80] sm:$0xff]  ;;  %v102_v30 = vld [vmem:[%s2824_s2 + $0x88] sm:$0xff]  ;;  %v103_v32 = vld [vmem:[%s2824_s2 + $0x90] sm:$0xff] }
  0x1f   :  { %504 = vmatprep.mubr.f32.mxu0 %v2828_v2  ;;  %v1915_v31 = vld [vmem:[%s2823_s1 + $0x48] sm:$0xff]  ;;  %v104_v33 = vld [vmem:[%s2824_s2 + $0x98] sm:$0xff]  ;;  %v1929_v34 = vld [vmem:[%s2823_s1 + $0x50] sm:$0xff] }
  0x20   :  { %206 = vperm.xlu0 %1733, %v99_v26   ;;  %v105_v35 = vld [vmem:[%s2824_s2 + $0xa0] sm:$0xff]  ;;  %v106_v36 = vld [vmem:[%s2824_s2 + $0xa8] sm:$0xff]  ;;  %v1943_v37 = vld [vmem:[%s2823_s1 + $0x58] sm:$0xff] }
  0x21   :  { %211 = vperm.xlu1 %1734, %v100_v27   ;;  %v107_v38 = vld [vmem:[%s2824_s2 + $0xb0] sm:$0xff]  ;;  %v108_v39 = vld [vmem:[%s2824_s2 + $0xb8] sm:$0xff]  ;;  %v1957_v40 = vld [vmem:[%s2823_s1 + $0x60] sm:$0xff] }
  0x22   :  { %1540 = vmatmul.mubr.msk.f32.gmra.mrb[14].mxu0 %vm296_vm1, %v28_v25  ;;  %v109_v41 = vld [vmem:[%s2824_s2 + $0xc0] sm:$0xff]  ;;  %v110_v42 = vld [vmem:[%s2824_s2 + $0xc8] sm:$0xff]  ;;  %v111_v44 = vld [vmem:[%s2824_s2 + $0xd0] sm:$0xff] }
  0x23   :  { %510 = vmatprep.mubr.f32.mxu0 %v2828_v2  ;;  %v1971_v43 = vld [vmem:[%s2823_s1 + $0x68] sm:$0xff]  ;;  %v112_v45 = vld [vmem:[%s2824_s2 + $0xd8] sm:$0xff]  ;;  %v1985_v46 = vld [vmem:[%s2823_s1 + $0x70] sm:$0xff] }
  0x24   :  { %216 = vperm.xlu0 %1733, %v101_v29   ;;  %v113_v47 = vld [vmem:[%s2824_s2 + $0xe0] sm:$0xff]  ;;  %v114_v48 = vld [vmem:[%s2824_s2 + $0xe8] sm:$0xff]  ;;  %v1999_v49 = vld [vmem:[%s2823_s1 + $0x78] sm:$0xff] }
  0x25   :  { %221 = vperm.xlu1 %1734, %v102_v30   ;;  %v115_v50 = vld [vmem:[%s2824_s2 + $0xf0] sm:$0xff]  ;;  %v116_v51 = vld [vmem:[%s2824_s2 + $0xf8] sm:$0xff]  ;;  %v2013_v52 = vld [vmem:[%s2823_s1 + $0x80] sm:$0xff] }
  0x26   :  { %1541 = vmatmul.mubr.msk.f32.gmra.mrb[16].mxu0 %vm296_vm1, %v1901_v28  ;;  %v117_v53 = vld [vmem:[%s2826_s4] sm:$0xff]  ;;  %v118_v54 = vld [vmem:[%s2826_s4 + $0x8] sm:$0xff]  ;;  %v119_v56 = vld [vmem:[%s2826_s4 + $0x10] sm:$0xff] }
  0x27   :  { %516 = vmatprep.mubr.f32.mxu0 %v2828_v2  ;;  %v2027_v55 = vld [vmem:[%s2823_s1 + $0x88] sm:$0xff]  ;;  %v120_v57 = vld [vmem:[%s2826_s4 + $0x18] sm:$0xff]  ;;  %v2041_v58 = vld [vmem:[%s2823_s1 + $0x90] sm:$0xff] }
  0x28   :  { %226 = vperm.xlu0 %1733, %v103_v32   ;;  %v121_v59 = vld [vmem:[%s2826_s4 + $0x20] sm:$0xff]  ;;  %v122_v60 = vld [vmem:[%s2826_s4 + $0x28] sm:$0xff]  ;;  %v2055_v61 = vld [vmem:[%s2823_s1 + $0x98] sm:$0xff] }
  0x29   :  { %231 = vperm.xlu1 %1734, %v104_v33   ;;  %v123_v62 = vld [vmem:[%s2826_s4 + $0x30] sm:$0xff]  ;;  %v124_v63 = vld [vmem:[%s2826_s4 + $0x38] sm:$0xff]  ;;  %v2069_v0 = vld [vmem:[%s2823_s1 + $0xa0] sm:$0xff] }
  0x2a   :  { %1542 = vmatmul.mubr.msk.f32.gmra.mrb[18].mxu0 %vm296_vm1, %v1915_v31  ;;  %v125_v1 = vld [vmem:[%s2826_s4 + $0x40] sm:$0xff]  ;;  %v126_v3 = vld [vmem:[%s2826_s4 + $0x48] sm:$0xff]  ;;  %v127_v5 = vld [vmem:[%s2826_s4 + $0x50] sm:$0xff] }
  0x2b   :  { %522 = vmatprep.mubr.f32.mxu0 %v2828_v2  ;;  %v2083_v4 = vld [vmem:[%s2823_s1 + $0xa8] sm:$0xff]  ;;  %v128_v6 = vld [vmem:[%s2826_s4 + $0x58] sm:$0xff]  ;;  %v2097_v7 = vld [vmem:[%s2823_s1 + $0xb0] sm:$0xff] }
  0x2c   :  { %236 = vperm.xlu0 %1733, %v105_v35   ;;  %v129_v8 = vld [vmem:[%s2826_s4 + $0x60] sm:$0xff]  ;;  %v130_v9 = vld [vmem:[%s2826_s4 + $0x68] sm:$0xff]  ;;  %v2111_v10 = vld [vmem:[%s2823_s1 + $0xb8] sm:$0xff] }
  0x2d   :  { %241 = vperm.xlu1 %1734, %v106_v36   ;;  %v131_v11 = vld [vmem:[%s2826_s4 + $0x70] sm:$0xff]  ;;  %v132_v12 = vld [vmem:[%s2826_s4 + $0x78] sm:$0xff]  ;;  %v2125_v13 = vld [vmem:[%s2823_s1 + $0xc0] sm:$0xff] }
  0x2e   :  { %1543 = vmatmul.mubr.msk.f32.gmra.mrb[20].mxu0 %vm296_vm1, %v1929_v34  ;;  %v2133_v14 = vld [vmem:[%s2823_s1 + $0xc8] sm:$0xff]  ;;  %v2141_v15 = vld [vmem:[%s2823_s1 + $0xd0] sm:$0xff]  ;;  %v2149_v16 = vld [vmem:[%s2823_s1 + $0xd8] sm:$0xff] }
  0x2f   :  { %528 = vmatprep.mubr.f32.mxu0 %v2828_v2  ;;  %v2157_v17 = vld [vmem:[%s2823_s1 + $0xe0] sm:$0xff]  ;;  %v2165_v18 = vld [vmem:[%s2823_s1 + $0xe8] sm:$0xff]  ;;  %v2173_v19 = vld [vmem:[%s2823_s1 + $0xf0] sm:$0xff] }
  0x30   :  { %246 = vperm.xlu0 %1733, %v107_v38   ;;  %v2181_v20 = vld [vmem:[%s2823_s1 + $0xf8] sm:$0xff]  ;;  %v54_v32 = vld [vmem:[%s2825_s3 + $0x8] sm:$0xff] }
  0x31   :  { %251 = vperm.xlu1 %1734, %v108_v39   ;;  %863 = vmatprep.mubr.f32.mxu1 %v54_v32 }
  0x32   :  { %1544 = vmatmul.mubr.msk.f32.gmra.mrb[22].mxu0 %vm296_vm1, %v1943_v37 }
  0x33   :  { %534 = vmatprep.mubr.f32.mxu0 %v2828_v2 }
  0x34   :  { %256 = vperm.xlu0 %1733, %v109_v41  }
  0x35   :  { %261 = vperm.xlu1 %1734, %v110_v42  }
  0x36   :  { %1545 = vmatmul.mubr.msk.f32.gmra.mrb[24].mxu0 %vm296_vm1, %v1957_v40 }
  0x37   :  { %540 = vmatprep.mubr.f32.mxu0 %v2828_v2 }
  0x38   :  { %266 = vperm.xlu0 %1733, %v111_v44  }
  0x39   :  { %271 = vperm.xlu1 %1734, %v112_v45  }
  0x3a   :  { %1546 = vmatmul.mubr.msk.f32.gmra.mrb[26].mxu0 %vm296_vm1, %v1971_v43 }
  0x3b   :  { %546 = vmatprep.mubr.f32.mxu0 %v2828_v2 }
  0x3c   :  { %276 = vperm.xlu0 %1733, %v113_v47  }
  0x3d   :  { %281 = vperm.xlu1 %1734, %v114_v48  }
  0x3e   :  { %1547 = vmatmul.mubr.msk.f32.gmra.mrb[28].mxu0 %vm296_vm1, %v1985_v46 }
  0x3f   :  { %552 = vmatprep.mubr.f32.mxu0 %v2828_v2 }
  0x40   :  { %286 = vperm.xlu0 %1733, %v115_v50  }
  0x41   :  { %291 = vperm.xlu1 %1734, %v116_v51  }
  0x42   :  { %1548 = vmatmul.mubr.msk.f32.gmra.mrb[30].mxu0 %vm296_vm1, %v1999_v49 }
  0x43   :  { %558 = vmatprep.mubr.f32.mxu0 %v2828_v2 }
  0x44   :  { %721 = vperm.xlu0 %1733, %v117_v53  }
  0x45   :  { %726 = vperm.xlu1 %1734, %v118_v54  }
  0x46   :  { %1549 = vmatmul.mubr.msk.f32.gmra.mrb[32].mxu0 %vm296_vm1, %v2013_v52 }
  0x47   :  { %564 = vmatprep.mubr.f32.mxu0 %v2828_v2 }
  0x48   :  { %731 = vperm.xlu0 %1733, %v119_v56  }
  0x49   :  { %736 = vperm.xlu1 %1734, %v120_v57  }
  0x4a   :  { %1550 = vmatmul.mubr.msk.f32.gmra.mrb[34].mxu0 %vm296_vm1, %v2027_v55 }
  0x4b   :  { %570 = vmatprep.mubr.f32.mxu0 %v2828_v2 }
  0x4c   :  { %741 = vperm.xlu0 %1733, %v121_v59  }
  0x4d   :  { %746 = vperm.xlu1 %1734, %v122_v60  }
  0x4e   :  { %1551 = vmatmul.mubr.msk.f32.gmra.mrb[36].mxu0 %vm296_vm1, %v2041_v58 }
  0x4f   :  { %576 = vmatprep.mubr.f32.mxu0 %v2828_v2 }
  0x50   :  { %751 = vperm.xlu0 %1733, %v123_v62  }
  0x51   :  { %756 = vperm.xlu1 %1734, %v124_v63  }
  0x52   :  { %1552 = vmatmul.mubr.msk.f32.gmra.mrb[38].mxu0 %vm296_vm1, %v2055_v61 }
  0x53   :  { %582 = vmatprep.mubr.f32.mxu0 %v2828_v2 }
  0x54   :  { %761 = vperm.xlu0 %1733, %v125_v1  }
  0x55   :  { %766 = vperm.xlu1 %1734, %v126_v3  }
  0x56   :  { %1553 = vmatmul.mubr.msk.f32.gmra.mrb[40].mxu0 %vm296_vm1, %v2069_v0 }
  0x57   :  { %588 = vmatprep.mubr.f32.mxu0 %v2828_v2 }
  0x58   :  { %771 = vperm.xlu0 %1733, %v127_v5  }
  0x59   :  { %776 = vperm.xlu1 %1734, %v128_v6  }
  0x5a   :  { %1554 = vmatmul.mubr.msk.f32.gmra.mrb[42].mxu0 %vm296_vm1, %v2083_v4 }
  0x5b   :  { %594 = vmatprep.mubr.f32.mxu0 %v2828_v2 }
  0x5c   :  { %781 = vperm.xlu0 %1733, %v129_v8  }
  0x5d   :  { %786 = vperm.xlu1 %1734, %v130_v9  }
  0x5e   :  { %1555 = vmatmul.mubr.msk.f32.gmra.mrb[44].mxu0 %vm296_vm1, %v2097_v7 }
  0x5f   :  { %600 = vmatprep.mubr.f32.mxu0 %v2828_v2 }
  0x60   :  { %791 = vperm.xlu0 %1733, %v131_v11  }
  0x61   :  { %796 = vperm.xlu1 %1734, %v132_v12  }
  0x62   :  { %1556 = vmatmul.mubr.msk.f32.gmra.mrb[46].mxu0 %vm296_vm1, %v2111_v10 }
  0x63   :  { %606 = vmatprep.mubr.f32.mxu0 %v2828_v2 }
  0x66   :  { %1557 = vmatmul.mubr.msk.f32.gmra.mrb[48].mxu0 %vm296_vm1, %v2125_v13 }
  0x67   :  { %612 = vmatprep.mubr.f32.mxu0 %v2828_v2 }
  0x6a   :  { %1558 = vmatmul.mubr.msk.f32.gmra.mrb[50].mxu0 %vm296_vm1, %v2133_v14 }
  0x6b   :  { %618 = vmatprep.mubr.f32.mxu0 %v2828_v2 }
  0x6e   :  { %1559 = vmatmul.mubr.msk.f32.gmra.mrb[52].mxu0 %vm296_vm1, %v2141_v15 }
  0x6f   :  { %624 = vmatprep.mubr.f32.mxu0 %v2828_v2 }
  0x72   :  { %1560 = vmatmul.mubr.msk.f32.gmra.mrb[54].mxu0 %vm296_vm1, %v2149_v16 }
  0x73   :  { %630 = vmatprep.mubr.f32.mxu0 %v2828_v2 }
  0x76   :  { %1561 = vmatmul.mubr.msk.f32.gmra.mrb[56].mxu0 %vm296_vm1, %v2157_v17 }
  0x77   :  { %636 = vmatprep.mubr.f32.mxu0 %v2828_v2 }
  0x7a   :  { %1562 = vmatmul.mubr.msk.f32.gmra.mrb[58].mxu0 %vm296_vm1, %v2165_v18 }
  0x7b   :  { %642 = vmatprep.mubr.f32.mxu0 %v2828_v2 }
  0x7e   :  { %1563 = vmatmul.mubr.msk.f32.gmra.mrb[60].mxu0 %vm296_vm1, %v2173_v19 }
  0x7f   :  { %648 = vmatprep.mubr.f32.mxu0 %v2828_v2 }
  0x82   :  { %1564 = vmatmul.mubr.msk.f32.gmra.mrb[62].mxu0 %vm296_vm1, %v2181_v20  ;;  %v2195_v33 = vpop.permute.xlu1 %146 }
  0x83   :  { %v2185_v21 = vpop.permute.xlu0 %136  ;;  %1385 = vmatprep.mubr.f32.mxu0 %v54_v32 }
  0x86   :  { %v2199_v50 = vpop.permute.xlu1 %151 }
  0x87   :  { %v2188_v25 = vpop.permute.xlu0 %141 }
  0x8a   :  { %v2207_v11 = vpop.permute.xlu1 %161 }
  0x8b   :  { %v2204_v6 = vpop.permute.xlu0 %156 }
  0xd9   :  { %v464_v22 = vpop.f32.mrb[0].mxu0 }
  0xda   :  { %v466_v23 = vpop.f32.mrb[1].mxu0  ;;  %v465_v24 = vadd.f32 %v464_v22, %v2185_v21 }
  0xdb   :  { %v467_v26 = vadd.f32 %v466_v23, %v2185_v21 }
  0xdc   :  { %v655_v36 = vmax.f32 %v465_v24, 0.0 }
  0xdd   :  { %v470_v27 = vpop.f32.mrb[2].mxu0  ;;  %v656_v39 = vmax.f32 %v467_v26, 0.0 }
  0xde   :  { %v471_v29 = vadd.f32 %v470_v27, %v2188_v25  ;;  %v472_v30 = vpop.f32.mrb[3].mxu0 }
  0xdf   :  { %v473_v35 = vadd.f32 %v472_v30, %v2188_v25 }
  0xe0   :  { %v657_v38 = vmax.f32 %v471_v29, 0.0 }
  0xe1   :  { %v658_v41 = vmax.f32 %v473_v35, 0.0  ;;  %v476_v42 = vpop.f32.mrb[4].mxu0 }
  0xe2   :  { %v478_v44 = vpop.f32.mrb[5].mxu0  ;;  %v1602_v45 = vpack.c.bf16 %v657_v38, %v655_v36  ;;  %v477_v48 = vadd.f32 %v476_v42, %v2195_v33 }
  0xe3   :  { %v1600_v47 = vpack.c.bf16 %v658_v41, %v656_v39  ;;  %v479_v51 = vadd.f32 %v478_v44, %v2195_v33  ;;  %v2212_v39 = vpop.permute.xlu0 %166  ;;  %v2215_v44 = vpop.permute.xlu1 %171 }
  0xe4   :  { %v659_v59 = vmax.f32 %v477_v48, 0.0 }
  0xe5   :  { %v482_v53 = vpop.f32.mrb[6].mxu0  ;;  %1601 = vmatprep.subr.bf16.mxu1 %v1600_v47  ;;  %v660_v62 = vmax.f32 %v479_v51, 0.0 }
  0xe6   :  { %v483_v54 = vadd.f32 %v482_v53, %v2199_v50  ;;  %v484_v56 = vpop.f32.mrb[7].mxu0  ;;  %1603 = vmatpush1.bf16.msra.mxu1 %v1602_v45 }
  0xe7   :  { %v485_v57 = vadd.f32 %v484_v56, %v2199_v50 }
  0xe8   :  { %v661_v60 = vmax.f32 %v483_v54, 0.0 }
  0xe9   :  { %v662_v63 = vmax.f32 %v485_v57, 0.0  ;;  %v488_v1 = vpop.f32.mrb[8].mxu0 }
  0xea   :  { %v1606_v3 = vpack.c.bf16 %v661_v60, %v659_v59  ;;  %v490_v5 = vpop.f32.mrb[9].mxu0  ;;  %v489_v9 = vadd.f32 %v488_v1, %v2204_v6  ;;  %v2220_v1 = vpop.permute.xlu0 %176 }
  0xeb   :  { %v1604_v8 = vpack.c.bf16 %v662_v63, %v660_v62  ;;  %v491_v12 = vadd.f32 %v490_v5, %v2204_v6 }
  0xec   :  { %v663_v27 = vmax.f32 %v489_v9, 0.0 }
  0xed   :  { %v494_v22 = vpop.f32.mrb[10].mxu0  ;;  %1605 = vmatprep.subr.bf16.mxu1 %v1604_v8  ;;  %v664_v30 = vmax.f32 %v491_v12, 0.0  ;;  %v2223_v8 = vpop.permute.xlu1 %181 }
  0xee   :  { %v495_v23 = vadd.f32 %v494_v22, %v2207_v11  ;;  %v496_v24 = vpop.f32.mrb[11].mxu0  ;;  %1607 = vmatpush1.bf16.msra.mxu1 %v1606_v3 }
  0xef   :  { %v497_v26 = vadd.f32 %v496_v24, %v2207_v11 }
  0xf0   :  { %v665_v29 = vmax.f32 %v495_v23, 0.0 }
  0xf1   :  { %v666_v32 = vmax.f32 %v497_v26, 0.0  ;;  %v500_v35 = vpop.f32.mrb[12].mxu0 }
  0xf2   :  { %v1610_v36 = vpack.c.bf16 %v665_v29, %v663_v27  ;;  %v502_v38 = vpop.f32.mrb[13].mxu0  ;;  %v501_v42 = vadd.f32 %v500_v35, %v2212_v39 }
  0xf3   :  { %v1608_v41 = vpack.c.bf16 %v666_v32, %v664_v30  ;;  %v503_v45 = vadd.f32 %v502_v38, %v2212_v39  ;;  %v2228_v38 = vpop.permute.xlu0 %186 }
  0xf4   :  { %v667_v54 = vmax.f32 %v501_v42, 0.0 }
  0xf5   :  { %v506_v47 = vpop.f32.mrb[14].mxu0  ;;  %1609 = vmatprep.subr.bf16.mxu1 %v1608_v41  ;;  %v668_v57 = vmax.f32 %v503_v45, 0.0  ;;  %v2231_v45 = vpop.permute.xlu1 %191 }
  0xf6   :  { %v507_v48 = vadd.f32 %v506_v47, %v2215_v44  ;;  %v508_v51 = vpop.f32.mrb[15].mxu0  ;;  %1611 = vmatpush1.bf16.msra.mxu1 %v1610_v36 }
  0xf7   :  { %v509_v53 = vadd.f32 %v508_v51, %v2215_v44 }
  0xf8   :  { %v669_v56 = vmax.f32 %v507_v48, 0.0 }
  0xf9   :  { %v670_v59 = vmax.f32 %v509_v53, 0.0  ;;  %v512_v60 = vpop.f32.mrb[16].mxu0 }
  0xfa   :  { %v1614_v62 = vpack.c.bf16 %v669_v56, %v667_v54  ;;  %v514_v63 = vpop.f32.mrb[17].mxu0  ;;  %v513_v5 = vadd.f32 %v512_v60, %v2220_v1 }
  0xfb   :  { %v1612_v3 = vpack.c.bf16 %v670_v59, %v668_v57  ;;  %v515_v9 = vadd.f32 %v514_v63, %v2220_v1 }
  0xfc   :  { %v671_v26 = vmax.f32 %v513_v5, 0.0  ;;  %v2236_v5 = vpop.permute.xlu0 %196 }
  0xfd   :  { %v518_v12 = vpop.f32.mrb[18].mxu0  ;;  %1613 = vmatprep.subr.bf16.mxu1 %v1612_v3  ;;  %v672_v29 = vmax.f32 %v515_v9, 0.0 }
  0xfe   :  { %v519_v22 = vadd.f32 %v518_v12, %v2223_v8  ;;  %v520_v23 = vpop.f32.mrb[19].mxu0  ;;  %1615 = vmatpush1.bf16.msra.mxu1 %v1614_v62 }
  0xff   :  { %v521_v24 = vadd.f32 %v520_v23, %v2223_v8 }
 0x100   :  { %v673_v27 = vmax.f32 %v519_v22, 0.0  ;;  %v2239_v22 = vpop.permute.xlu1 %201 }
 0x101   :  { %v674_v30 = vmax.f32 %v521_v24, 0.0  ;;  %v524_v32 = vpop.f32.mrb[20].mxu0 }
 0x102   :  { %v1618_v35 = vpack.c.bf16 %v673_v27, %v671_v26  ;;  %v526_v36 = vpop.f32.mrb[21].mxu0  ;;  %v525_v42 = vadd.f32 %v524_v32, %v2228_v38 }
 0x103   :  { %v1616_v41 = vpack.c.bf16 %v674_v30, %v672_v29  ;;  %v527_v47 = vadd.f32 %v526_v36, %v2228_v38 }
 0x104   :  { %v675_v56 = vmax.f32 %v525_v42, 0.0 }
 0x105   :  { %v530_v48 = vpop.f32.mrb[22].mxu0  ;;  %1617 = vmatprep.subr.bf16.mxu1 %v1616_v41  ;;  %v676_v59 = vmax.f32 %v527_v47, 0.0 }
 0x106   :  { %v531_v51 = vadd.f32 %v530_v48, %v2231_v45  ;;  %v532_v53 = vpop.f32.mrb[23].mxu0  ;;  %1619 = vmatpush1.bf16.msra.mxu1 %v1618_v35  ;;  %v2244_v48 = vpop.permute.xlu0 %206 }
 0x107   :  { %v533_v54 = vadd.f32 %v532_v53, %v2231_v45 }
 0x108   :  { %v677_v57 = vmax.f32 %v531_v51, 0.0 }
 0x109   :  { %v678_v60 = vmax.f32 %v533_v54, 0.0  ;;  %v536_v62 = vpop.f32.mrb[24].mxu0  ;;  %v2247_v54 = vpop.permute.xlu1 %211 }
 0x10a   :  { %v1622_v63 = vpack.c.bf16 %v677_v57, %v675_v56  ;;  %v538_v3 = vpop.f32.mrb[25].mxu0  ;;  %v537_v12 = vadd.f32 %v536_v62, %v2236_v5 }
 0x10b   :  { %v1620_v9 = vpack.c.bf16 %v678_v60, %v676_v59  ;;  %v539_v23 = vadd.f32 %v538_v3, %v2236_v5 }
 0x10c   :  { %v679_v30 = vmax.f32 %v537_v12, 0.0 }
 0x10d   :  { %v542_v24 = vpop.f32.mrb[26].mxu0  ;;  %1621 = vmatprep.subr.bf16.mxu1 %v1620_v9  ;;  %v680_v35 = vmax.f32 %v539_v23, 0.0 }
 0x10e   :  { %v543_v26 = vadd.f32 %v542_v24, %v2239_v22  ;;  %v544_v27 = vpop.f32.mrb[27].mxu0  ;;  %1623 = vmatpush1.bf16.msra.mxu1 %v1622_v63 }
 0x10f   :  { %v545_v29 = vadd.f32 %v544_v27, %v2239_v22  ;;  %v2252_v27 = vpop.permute.xlu0 %216 }
 0x110   :  { %v681_v32 = vmax.f32 %v543_v26, 0.0 }
 0x111   :  { %v682_v36 = vmax.f32 %v545_v29, 0.0  ;;  %v548_v41 = vpop.f32.mrb[28].mxu0 }
 0x112   :  { %v1626_v42 = vpack.c.bf16 %v681_v32, %v679_v30  ;;  %v550_v47 = vpop.f32.mrb[29].mxu0  ;;  %v549_v53 = vadd.f32 %v548_v41, %v2244_v48  ;;  %v2255_v32 = vpop.permute.xlu1 %221 }
 0x113   :  { %v1624_v51 = vpack.c.bf16 %v682_v36, %v680_v35  ;;  %v551_v56 = vadd.f32 %v550_v47, %v2244_v48 }
 0x114   :  { %v683_v63 = vmax.f32 %v549_v53, 0.0 }
 0x115   :  { %v554_v57 = vpop.f32.mrb[30].mxu0  ;;  %1625 = vmatprep.subr.bf16.mxu1 %v1624_v51  ;;  %v684_v9 = vmax.f32 %v551_v56, 0.0 }
 0x116   :  { %v555_v59 = vadd.f32 %v554_v57, %v2247_v54  ;;  %v556_v60 = vpop.f32.mrb[31].mxu0  ;;  %1627 = vmatpush1.bf16.msra.mxu1 %v1626_v42 }
 0x117   :  { %v557_v62 = vadd.f32 %v556_v60, %v2247_v54 }
 0x118   :  { %v685_v3 = vmax.f32 %v555_v59, 0.0 }
 0x119   :  { %v686_v12 = vmax.f32 %v557_v62, 0.0  ;;  %v560_v23 = vpop.f32.mrb[32].mxu0 }
 0x11a   :  { %v1630_v24 = vpack.c.bf16 %v685_v3, %v683_v63  ;;  %v562_v26 = vpop.f32.mrb[33].mxu0  ;;  %v561_v30 = vadd.f32 %v560_v23, %v2252_v27  ;;  %v2260_v63 = vpop.permute.xlu0 %226 }
 0x11b   :  { %v1628_v29 = vpack.c.bf16 %v686_v12, %v684_v9  ;;  %v563_v35 = vadd.f32 %v562_v26, %v2252_v27  ;;  %v2263_v12 = vpop.permute.xlu1 %231 }
 0x11c   :  { %v687_v51 = vmax.f32 %v561_v30, 0.0 }
 0x11d   :  { %v566_v36 = vpop.f32.mrb[34].mxu0  ;;  %1629 = vmatprep.subr.bf16.mxu1 %v1628_v29  ;;  %v688_v56 = vmax.f32 %v563_v35, 0.0 }
 0x11e   :  { %v567_v41 = vadd.f32 %v566_v36, %v2255_v32  ;;  %v568_v42 = vpop.f32.mrb[35].mxu0  ;;  %1631 = vmatpush1.bf16.msra.mxu1 %v1630_v24 }
 0x11f   :  { %v569_v47 = vadd.f32 %v568_v42, %v2255_v32 }
 0x120   :  { %v689_v53 = vmax.f32 %v567_v41, 0.0 }
 0x121   :  { %v690_v57 = vmax.f32 %v569_v47, 0.0  ;;  %v572_v59 = vpop.f32.mrb[36].mxu0 }
 0x122   :  { %v1634_v60 = vpack.c.bf16 %v689_v53, %v687_v51  ;;  %v574_v62 = vpop.f32.mrb[37].mxu0  ;;  %v573_v9 = vadd.f32 %v572_v59, %v2260_v63 }
 0x123   :  { %v1632_v3 = vpack.c.bf16 %v690_v57, %v688_v56  ;;  %v575_v23 = vadd.f32 %v574_v62, %v2260_v63  ;;  %v2268_v56 = vpop.permute.xlu0 %236  ;;  %v2271_v62 = vpop.permute.xlu1 %241 }
 0x124   :  { %v691_v35 = vmax.f32 %v573_v9, 0.0  ;;  %2878 = vst [vmem:[#allocation5_spill] sm:$0xff] %v2268_v56  ;;  %2879 = vst [vmem:[#allocation6_spill] sm:$0xff] %v2271_v62 }
 0x125   :  { %v578_v26 = vpop.f32.mrb[38].mxu0  ;;  %1633 = vmatprep.subr.bf16.mxu1 %v1632_v3  ;;  %v692_v41 = vmax.f32 %v575_v23, 0.0 }
 0x126   :  { %v579_v24 = vadd.f32 %v578_v26, %v2263_v12  ;;  %v580_v29 = vpop.f32.mrb[39].mxu0  ;;  %1635 = vmatpush1.bf16.msra.mxu1 %v1634_v60 }
 0x127   :  { %v581_v30 = vadd.f32 %v580_v29, %v2263_v12 }
 0x128   :  { %v693_v36 = vmax.f32 %v579_v24, 0.0 }
 0x129   :  { %v694_v42 = vmax.f32 %v581_v30, 0.0  ;;  %v584_v47 = vpop.f32.mrb[40].mxu0 }
 0x12a   :  { %v1638_v51 = vpack.c.bf16 %v693_v36, %v691_v35  ;;  %v586_v53 = vpop.f32.mrb[41].mxu0  ;;  %v585_v59 = vadd.f32 %v584_v47, %v2268_v56  ;;  %v2276_v47 = vpop.permute.xlu0 %246 }
 0x12b   :  { %v1636_v57 = vpack.c.bf16 %v694_v42, %v692_v41  ;;  %v587_v3 = vadd.f32 %v586_v53, %v2268_v56  ;;  %2880 = vst [vmem:[#allocation7_spill] sm:$0xff] %v2276_v47  ;;  %v2279_v56 = vpop.permute.xlu1 %251 }
 0x12c   :  { %v695_v24 = vmax.f32 %v585_v59, 0.0  ;;  %2881 = vst [vmem:[#allocation8_spill] sm:$0xff] %v2279_v56 }
 0x12d   :  { %v590_v26 = vpop.f32.mrb[42].mxu0  ;;  %1637 = vmatprep.subr.bf16.mxu1 %v1636_v57  ;;  %v696_v30 = vmax.f32 %v587_v3, 0.0 }
 0x12e   :  { %v591_v60 = vadd.f32 %v590_v26, %v2271_v62  ;;  %v592_v9 = vpop.f32.mrb[43].mxu0  ;;  %1639 = vmatpush1.bf16.msra.mxu1 %v1638_v51 }
 0x12f   :  { %v593_v23 = vadd.f32 %v592_v9, %v2271_v62 }
 0x130   :  { %v697_v29 = vmax.f32 %v591_v60, 0.0 }
 0x131   :  { %v698_v35 = vmax.f32 %v593_v23, 0.0  ;;  %v596_v36 = vpop.f32.mrb[44].mxu0 }
 0x132   :  { %v1642_v41 = vpack.c.bf16 %v697_v29, %v695_v24  ;;  %v598_v42 = vpop.f32.mrb[45].mxu0  ;;  %v597_v53 = vadd.f32 %v596_v36, %v2276_v47  ;;  %v2284_v36 = vpop.permute.xlu0 %256 }
 0x133   :  { %v1640_v2 = vpack.c.bf16 %v698_v35, %v696_v30  ;;  %v599_v57 = vadd.f32 %v598_v42, %v2276_v47  ;;  %2882 = vst [vmem:[#allocation9_spill] sm:$0xff] %v2284_v36  ;;  %v2287_v47 = vpop.permute.xlu1 %261 }
 0x134   :  { %v699_v60 = vmax.f32 %v597_v53, 0.0  ;;  %2883 = vst [vmem:[#allocation10_spill] sm:$0xff] %v2287_v47 }
 0x135   :  { %v602_v26 = vpop.f32.mrb[46].mxu0  ;;  %1641 = vmatprep.subr.bf16.mxu1 %v1640_v2  ;;  %v700_v23 = vmax.f32 %v599_v57, 0.0 }
 0x136   :  { %v603_v51 = vadd.f32 %v602_v26, %v2279_v56  ;;  %v604_v59 = vpop.f32.mrb[47].mxu0  ;;  %1643 = vmatpush1.bf16.msra.mxu1 %v1642_v41 }
 0x137   :  { %v605_v3 = vadd.f32 %v604_v59, %v2279_v56 }
 0x138   :  { %v701_v9 = vmax.f32 %v603_v51, 0.0 }
 0x139   :  { %v702_v24 = vmax.f32 %v605_v3, 0.0  ;;  %v608_v29 = vpop.f32.mrb[48].mxu0 }
 0x13a   :  { %v1646_v30 = vpack.c.bf16 %v701_v9, %v699_v60  ;;  %v610_v35 = vpop.f32.mrb[49].mxu0  ;;  %v609_v42 = vadd.f32 %v608_v29, %v2284_v36  ;;  %v2292_v29 = vpop.permute.xlu0 %266 }
 0x13b   :  { %v1644_v62 = vpack.c.bf16 %v702_v24, %v700_v23  ;;  %v611_v2 = vadd.f32 %v610_v35, %v2284_v36  ;;  %2884 = vst [vmem:[#allocation11_spill] sm:$0xff] %v2292_v29  ;;  %v2295_v36 = vpop.permute.xlu1 %271 }
 0x13c   :  { %v703_v51 = vmax.f32 %v609_v42, 0.0  ;;  %2885 = vst [vmem:[#allocation12_spill] sm:$0xff] %v2295_v36 }
 0x13d   :  { %v614_v26 = vpop.f32.mrb[50].mxu0  ;;  %1645 = vmatprep.subr.bf16.mxu1 %v1644_v62  ;;  %v704_v3 = vmax.f32 %v611_v2, 0.0 }
 0x13e   :  { %v615_v41 = vadd.f32 %v614_v26, %v2287_v47  ;;  %v616_v53 = vpop.f32.mrb[51].mxu0  ;;  %1647 = vmatpush1.bf16.msra.mxu1 %v1646_v30 }
 0x13f   :  { %v617_v57 = vadd.f32 %v616_v53, %v2287_v47 }
 0x140   :  { %v705_v59 = vmax.f32 %v615_v41, 0.0 }
 0x141   :  { %v706_v60 = vmax.f32 %v617_v57, 0.0  ;;  %v620_v9 = vpop.f32.mrb[52].mxu0 }
 0x142   :  { %v1650_v23 = vpack.c.bf16 %v705_v59, %v703_v51  ;;  %v622_v24 = vpop.f32.mrb[53].mxu0  ;;  %v621_v35 = vadd.f32 %v620_v9, %v2292_v29  ;;  %v2300_v9 = vpop.permute.xlu0 %276 }
 0x143   :  { %v1648_v56 = vpack.c.bf16 %v706_v60, %v704_v3  ;;  %v623_v62 = vadd.f32 %v622_v24, %v2292_v29  ;;  %2886 = vst [vmem:[#allocation13_spill] sm:$0xff] %v2300_v9  ;;  %v2303_v29 = vpop.permute.xlu1 %281 }
 0x144   :  { %v707_v41 = vmax.f32 %v621_v35, 0.0 }
 0x145   :  { %v626_v26 = vpop.f32.mrb[54].mxu0  ;;  %1649 = vmatprep.subr.bf16.mxu1 %v1648_v56  ;;  %v708_v57 = vmax.f32 %v623_v62, 0.0 }
 0x146   :  { %v627_v30 = vadd.f32 %v626_v26, %v2295_v36  ;;  %v628_v42 = vpop.f32.mrb[55].mxu0  ;;  %1651 = vmatpush1.bf16.msra.mxu1 %v1650_v23 }
 0x147   :  { %v629_v2 = vadd.f32 %v628_v42, %v2295_v36 }
 0x148   :  { %v709_v53 = vmax.f32 %v627_v30, 0.0 }
 0x149   :  { %v710_v51 = vmax.f32 %v629_v2, 0.0  ;;  %v632_v59 = vpop.f32.mrb[56].mxu0 }
 0x14a   :  { %v1654_v3 = vpack.c.bf16 %v709_v53, %v707_v41  ;;  %v634_v60 = vpop.f32.mrb[57].mxu0  ;;  %v633_v24 = vadd.f32 %v632_v59, %v2300_v9  ;;  %v2308_v59 = vpop.permute.xlu0 %286 }
 0x14b   :  { %v1652_v47 = vpack.c.bf16 %v710_v51, %v708_v57  ;;  %v635_v56 = vadd.f32 %v634_v60, %v2300_v9  ;;  %v2311_v9 = vpop.permute.xlu1 %291 }
 0x14c   :  { %v711_v30 = vmax.f32 %v633_v24, 0.0 }
 0x14d   :  { %v638_v26 = vpop.f32.mrb[58].mxu0  ;;  %1653 = vmatprep.subr.bf16.mxu1 %v1652_v47  ;;  %v712_v2 = vmax.f32 %v635_v56, 0.0 }
 0x14e   :  { %v639_v23 = vadd.f32 %v638_v26, %v2303_v29  ;;  %v640_v35 = vpop.f32.mrb[59].mxu0  ;;  %1655 = vmatpush1.bf16.msra.mxu1 %v1654_v3 }
 0x14f   :  { %v641_v62 = vadd.f32 %v640_v35, %v2303_v29 }
 0x150   :  { %v713_v42 = vmax.f32 %v639_v23, 0.0 }
 0x151   :  { %v714_v41 = vmax.f32 %v641_v62, 0.0  ;;  %v644_v53 = vpop.f32.mrb[60].mxu0  ;;  %v1565_v62 = vld [vmem:[%s2822_s0 + $0x8] sm:$0xff] }
 0x152   :  { %v1658_v57 = vpack.c.bf16 %v713_v42, %v711_v30  ;;  %v646_v51 = vpop.f32.mrb[61].mxu0  ;;  %v645_v60 = vadd.f32 %v644_v53, %v2308_v59  ;;  %v995_v53 = vcombine.high %v1565_v62, %v1565_v62 }
 0x153   :  { %v1656_v36 = vpack.c.bf16 %v714_v41, %v712_v2  ;;  %v647_v47 = vadd.f32 %v646_v51, %v2308_v59  ;;  %v2335_v51 = vld [vmem:[%s2825_s3 + $0x10] sm:$0xff] }
 0x154   :  { %v715_v23 = vmax.f32 %v645_v60, 0.0  ;;  %v2341_v60 = vld [vmem:[%s2825_s3 + $0x28] sm:$0xff] }
 0x155   :  { %v650_v26 = vpop.f32.mrb[62].mxu0  ;;  %1657 = vmatprep.subr.bf16.mxu1 %v1656_v36  ;;  %v716_v30 = vmax.f32 %v647_v47, 0.0  ;;  %v2322_v36 = vld [vmem:[%s2825_s3] sm:$0xff] }
 0x156   :  { %v651_v3 = vadd.f32 %v650_v26, %v2311_v9  ;;  %v652_v24 = vpop.f32.mrb[63].mxu0  ;;  %1659 = vmatpush1.bf16.msra.mxu1 %v1658_v57  ;;  %v2327_v57 = vld [vmem:[%s2825_s3 + $0x18] sm:$0xff]  ;;  %v2348_v47 = vld [vmem:[%s2825_s3 + $0x20] sm:$0xff] }
 0x157   :  { %v653_v56 = vadd.f32 %v652_v24, %v2311_v9  ;;  %v2353_v26 = vld [vmem:[%s2825_s3 + $0x38] sm:$0xff]  ;;  %v2365_v24 = vld [vmem:[%s2825_s3 + $0x48] sm:$0xff] }
 0x158   :  { %v717_v35 = vmax.f32 %v651_v3, 0.0  ;;  %v2360_v3 = vld [vmem:[%s2825_s3 + $0x30] sm:$0xff] }
 0x159   :  { %v718_v42 = vmax.f32 %v653_v56, 0.0  ;;  %v2372_v56 = vld [vmem:[%s2825_s3 + $0x40] sm:$0xff] }
 0x15a   :  { %v1662_v2 = vpack.c.bf16 %v717_v35, %v715_v23  ;;  %v2377_v23 = vld [vmem:[%s2825_s3 + $0x58] sm:$0xff]  ;;  %v2384_v35 = vld [vmem:[%s2825_s3 + $0x50] sm:$0xff] }
 0x15b   :  { %v1660_v41 = vpack.c.bf16 %v718_v42, %v716_v30  ;;  %v2396_v30 = vld [vmem:[%s2825_s3 + $0x60] sm:$0xff]  ;;  %v2401_v42 = vld [vmem:[%s2825_s3 + $0x78] sm:$0xff] }
 0x15c   :  { %2887 = vst [vmem:[#allocation14_spill] sm:$0xff] %v2396_v30  ;;  %2888 = vst [vmem:[#allocation15_spill] sm:$0xff] %v2401_v42 }
 0x15d   :  { %1661 = vmatprep.subr.bf16.mxu1 %v1660_v41  ;;  %v2413_v41 = vld [vmem:[%s2825_s3 + $0x88] sm:$0xff] }
 0x15e   :  { %1663 = vmatpush1.bf16.msra.mxu1 %v1662_v2  ;;  %v2408_v2 = vld [vmem:[%s2825_s3 + $0x70] sm:$0xff]  ;;  %2890 = vst [vmem:[#allocation17_spill] sm:$0xff] %v2413_v41 }
 0x15f   :  { %1566 = vmatprep.subr.msk.mxu1 %vm393_vm0, %v995_v53  ;;  %2889 = vst [vmem:[#allocation16_spill] sm:$0xff] %v2408_v2  ;;  %v2420_v53 = vld [vmem:[%s2825_s3 + $0x80] sm:$0xff] }
 0x160   :  { %2891 = vst [vmem:[#allocation18_spill] sm:$0xff] %v2420_v53 }
 0x161   :  { %864 = vmatmul.mubr.f32.vlgmr.msra.gmra.mrb[0].mxu1 %v2322_v36 }
 0x162   :  { %869 = vmatprep.mubr.f32.mxu1 %v2327_v57  ;;  %1567 = vmatpush1.msk.msra.mxu1 %vm393_vm0, %v1565_v62  ;;  %v2389_v62 = vld [vmem:[%s2825_s3 + $0x68] sm:$0xff] }
 0x165   :  { %870 = vmatmul.mubr.f32.gmra.mrb[2].mxu1 %v2335_v51 }
 0x166   :  { %875 = vmatprep.mubr.f32.mxu1 %v2341_v60 }
 0x169   :  { %876 = vmatmul.mubr.f32.gmra.mrb[4].mxu1 %v2348_v47 }
 0x16a   :  { %881 = vmatprep.mubr.f32.mxu1 %v2353_v26 }
 0x16d   :  { %882 = vmatmul.mubr.f32.gmra.mrb[6].mxu1 %v2360_v3 }
 0x16e   :  { %887 = vmatprep.mubr.f32.mxu1 %v2365_v24 }
 0x171   :  { %888 = vmatmul.mubr.f32.gmra.mrb[8].mxu1 %v2372_v56 }
 0x172   :  { %893 = vmatprep.mubr.f32.mxu1 %v2377_v23 }
 0x175   :  { %894 = vmatmul.mubr.f32.gmra.mrb[10].mxu1 %v2384_v35 }
 0x176   :  { %899 = vmatprep.mubr.f32.mxu1 %v2389_v62 }
 0x179   :  { %900 = vmatmul.mubr.f32.gmra.mrb[12].mxu1 %v2396_v30  ;;  %v1737_v30 = vld [vmem:[%s2823_s1] sm:$0xff] }
 0x17a   :  { %905 = vmatprep.mubr.f32.mxu1 %v2401_v42  ;;  %v2425_v42 = vld [vmem:[%s2825_s3 + $0x98] sm:$0xff] }
 0x17b   :  { %2892 = vst [vmem:[#allocation19_spill] sm:$0xff] %v2425_v42 }
 0x17d   :  { %906 = vmatmul.mubr.f32.gmra.mrb[14].mxu1 %v2408_v2  ;;  %v2432_v2 = vld [vmem:[%s2825_s3 + $0x90] sm:$0xff] }
 0x17e   :  { %911 = vmatprep.mubr.f32.mxu1 %v2413_v41  ;;  %2893 = vst [vmem:[#allocation20_spill] sm:$0xff] %v2432_v2  ;;  %v2437_v41 = vld [vmem:[%s2825_s3 + $0xa8] sm:$0xff] }
 0x17f   :  { %2894 = vst [vmem:[#allocation21_spill] sm:$0xff] %v2437_v41 }
 0x181   :  { %912 = vmatmul.mubr.f32.gmra.mrb[16].mxu1 %v2420_v53  ;;  %v2444_v53 = vld [vmem:[%s2825_s3 + $0xa0] sm:$0xff] }
 0x182   :  { %917 = vmatprep.mubr.f32.mxu1 %v2425_v42  ;;  %2895 = vst [vmem:[#allocation22_spill] sm:$0xff] %v2444_v53  ;;  %v2449_v42 = vld [vmem:[%s2825_s3 + $0xb8] sm:$0xff] }
 0x183   :  { %2896 = vst [vmem:[#allocation23_spill] sm:$0xff] %v2449_v42 }
 0x185   :  { %918 = vmatmul.mubr.f32.gmra.mrb[18].mxu1 %v2432_v2  ;;  %v2456_v2 = vld [vmem:[%s2825_s3 + $0xb0] sm:$0xff] }
 0x186   :  { %923 = vmatprep.mubr.f32.mxu1 %v2437_v41  ;;  %2897 = vst [vmem:[#allocation24_spill] sm:$0xff] %v2456_v2  ;;  %v2461_v41 = vld [vmem:[%s2825_s3 + $0xc8] sm:$0xff] }
 0x187   :  { %2898 = vst [vmem:[#allocation25_spill] sm:$0xff] %v2461_v41 }
 0x189   :  { %924 = vmatmul.mubr.f32.gmra.mrb[20].mxu1 %v2444_v53  ;;  %v2468_v53 = vld [vmem:[%s2825_s3 + $0xc0] sm:$0xff] }
 0x18a   :  { %929 = vmatprep.mubr.f32.mxu1 %v2449_v42  ;;  %2899 = vst [vmem:[#allocation26_spill] sm:$0xff] %v2468_v53  ;;  %v2473_v42 = vld [vmem:[%s2825_s3 + $0xd8] sm:$0xff] }
 0x18b   :  { %2900 = vst [vmem:[#allocation27_spill] sm:$0xff] %v2473_v42 }
 0x18d   :  { %930 = vmatmul.mubr.f32.gmra.mrb[22].mxu1 %v2456_v2  ;;  %v2480_v2 = vld [vmem:[%s2825_s3 + $0xd0] sm:$0xff] }
 0x18e   :  { %935 = vmatprep.mubr.f32.mxu1 %v2461_v41  ;;  %2901 = vst [vmem:[#allocation28_spill] sm:$0xff] %v2480_v2  ;;  %v2485_v41 = vld [vmem:[%s2825_s3 + $0xe8] sm:$0xff] }
 0x18f   :  { %2902 = vst [vmem:[#allocation29_spill] sm:$0xff] %v2485_v41 }
 0x191   :  { %936 = vmatmul.mubr.f32.gmra.mrb[24].mxu1 %v2468_v53  ;;  %v2492_v53 = vld [vmem:[%s2825_s3 + $0xe0] sm:$0xff] }
 0x192   :  { %941 = vmatprep.mubr.f32.mxu1 %v2473_v42  ;;  %v2497_v42 = vld [vmem:[%s2825_s3 + $0xf8] sm:$0xff] }
 0x193   :  { %2903 = vst [vmem:[#allocation30_spill] sm:$0xff] %v2497_v42 }
 0x195   :  { %942 = vmatmul.mubr.f32.gmra.mrb[26].mxu1 %v2480_v2  ;;  %v2504_v2 = vld [vmem:[%s2825_s3 + $0xf0] sm:$0xff] }
 0x196   :  { %947 = vmatprep.mubr.f32.mxu1 %v2485_v41  ;;  %2904 = vst [vmem:[#allocation31_spill] sm:$0xff] %v2504_v2  ;;  %v2905_v41 = vmov 0.0  }
 0x199   :  { %948 = vmatmul.mubr.f32.gmra.mrb[28].mxu1 %v2492_v53 }
 0x19a   :  { %953 = vmatprep.mubr.f32.mxu1 %v2497_v42  ;;  %v1738_v42 = vld [vmem:[%s2823_s1 + $0x8] sm:$0xff] }
 0x19d   :  { %954 = vmatmul.mubr.f32.gmra.mrb[30].mxu1 %v2504_v2  ;;  %v1739_v2 = vld [vmem:[%s2823_s1 + $0x10] sm:$0xff] }
 0x19e   :  { %1064 = vmatprep.mubr.f32.mxu1 %v2905_v41 }
 0x1a1   :  { %1568 = vmatmul.mubr.msk.f32.vlgmr.msra.gmra.mrb[32].mxu1 %vm296_vm1, %v1737_v30  ;;  %v1740_v30 = vld [vmem:[%s2823_s1 + $0x18] sm:$0xff] }
 0x1a2   :  { %1070 = vmatprep.mubr.f32.mxu1 %v2905_v41 }
 0x1a5   :  { %1569 = vmatmul.mubr.msk.f32.gmra.mrb[34].mxu1 %vm296_vm1, %v1738_v42  ;;  %v1741_v42 = vld [vmem:[%s2823_s1 + $0x20] sm:$0xff] }
 0x1a6   :  { %1076 = vmatprep.mubr.f32.mxu1 %v2905_v41 }
 0x1a9   :  { %1570 = vmatmul.mubr.msk.f32.gmra.mrb[36].mxu1 %vm296_vm1, %v1739_v2  ;;  %v1742_v2 = vld [vmem:[%s2823_s1 + $0x28] sm:$0xff] }
 0x1aa   :  { %1082 = vmatprep.mubr.f32.mxu1 %v2905_v41 }
 0x1ad   :  { %1571 = vmatmul.mubr.msk.f32.gmra.mrb[38].mxu1 %vm296_vm1, %v1740_v30  ;;  %v1743_v30 = vld [vmem:[%s2823_s1 + $0x30] sm:$0xff] }
 0x1ae   :  { %1088 = vmatprep.mubr.f32.mxu1 %v2905_v41 }
 0x1b1   :  { %1572 = vmatmul.mubr.msk.f32.gmra.mrb[40].mxu1 %vm296_vm1, %v1741_v42  ;;  %v1744_v42 = vld [vmem:[%s2823_s1 + $0x38] sm:$0xff]  ;;  %s1771_s1 = smov [#allocation2]  }
 0x1b2   :  { %1094 = vmatprep.mubr.f32.mxu1 %v2905_v41  ;;  %s1520_s23 = sshll.u32 %s1771_s1, 4  ;;  %s1521_s23 = int_to_ptr.vmem [resolvable:$true] %s1520_s23 }
 0x1b3   :  { %s1745_s24 = scalar_lea.vmem %s1521_s23, 8192  ;;  %p1750_p1 = scmp.lt.s32.totalorder %s1521_s23, %s1521_s23 }
 0x1b4   :  { %p1746_p0 = scmp.ne.s32.totalorder %s1521_s23, %s1745_s24  ;;  %p1751_p2 = scmp.lt.s32.totalorder %s1745_s24, %s1745_s24 }
 0x1b5   :  { %1573 = vmatmul.mubr.msk.f32.gmra.mrb[42].mxu1 %vm296_vm1, %v1742_v2 }
 0x1b6   :  { %1100 = vmatprep.mubr.f32.mxu1 %v2905_v41  ;;  %p1752_p3 = por %p1751_p2, %p1750_p1 }
 0x1b8   :  { %p1753_p4 = pnand %p1752_p3, %p1746_p0 }
 0x1b9   :  { %1574 = vmatmul.mubr.msk.f32.gmra.mrb[44].mxu1 %vm296_vm1, %v1743_v30 }
 0x1ba   :  { %1106 = vmatprep.mubr.f32.mxu1 %v2905_v41 }
 0x1bd   :  { %1575 = vmatmul.mubr.msk.f32.gmra.mrb[46].mxu1 %vm296_vm1, %v1744_v42 }
 0x1be   :  { %1112 = vmatprep.mubr.f32.mxu1 %v2905_v41 }
 0x1c1   :  { %1576 = vmatmul.mubr.msk.f32.gmra.mrb[48].mxu1 %vm296_vm1, %v1901_v28  ;;  %v2619_v28 = vpop.permute.xlu0 %721 }
 0x1c2   :  { %1118 = vmatprep.mubr.f32.mxu1 %v2905_v41 }
 0x1c5   :  { %1577 = vmatmul.mubr.msk.f32.gmra.mrb[50].mxu1 %vm296_vm1, %v1915_v31 }
 0x1c6   :  { %1124 = vmatprep.mubr.f32.mxu1 %v2905_v41 }
 0x1c9   :  { %1578 = vmatmul.mubr.msk.f32.gmra.mrb[52].mxu1 %vm296_vm1, %v1929_v34 }
 0x1ca   :  { %1130 = vmatprep.mubr.f32.mxu1 %v2905_v41 }
 0x1cd   :  { %1579 = vmatmul.mubr.msk.f32.gmra.mrb[54].mxu1 %vm296_vm1, %v1943_v37 }
 0x1ce   :  { %1136 = vmatprep.mubr.f32.mxu1 %v2905_v41 }
 0x1d1   :  { %1580 = vmatmul.mubr.msk.f32.gmra.mrb[56].mxu1 %vm296_vm1, %v1957_v40 }
 0x1d2   :  { %1142 = vmatprep.mubr.f32.mxu1 %v2905_v41 }
 0x1d5   :  { %1581 = vmatmul.mubr.msk.f32.gmra.mrb[58].mxu1 %vm296_vm1, %v1971_v43  ;;  %v2623_v43 = vpop.permute.xlu1 %726 }
 0x1d6   :  { %1148 = vmatprep.mubr.f32.mxu1 %v2905_v41 }
 0x1d9   :  { %1582 = vmatmul.mubr.msk.f32.gmra.mrb[60].mxu1 %vm296_vm1, %v1985_v46 }
 0x1da   :  { %1154 = vmatprep.mubr.f32.mxu1 %v2905_v41 }
 0x1dd   :  { %1583 = vmatmul.mubr.msk.f32.gmra.mrb[62].mxu1 %vm296_vm1, %v1999_v49 }
 0x1de   :  { %1160 = vmatprep.mubr.f32.mxu1 %v2905_v41 }
 0x1e1   :  { %1584 = vmatmul.mubr.msk.f32.gmra.mrb[64].mxu1 %vm296_vm1, %v2013_v52 }
 0x1e2   :  { %1166 = vmatprep.mubr.f32.mxu1 %v2905_v41 }
 0x1e5   :  { %1585 = vmatmul.mubr.msk.f32.gmra.mrb[66].mxu1 %vm296_vm1, %v2027_v55 }
 0x1e6   :  { %1172 = vmatprep.mubr.f32.mxu1 %v2905_v41 }
 0x1e9   :  { %1586 = vmatmul.mubr.msk.f32.gmra.mrb[68].mxu1 %vm296_vm1, %v2041_v58  ;;  %v2627_v58 = vpop.permute.xlu0 %731 }
 0x1ea   :  { %1178 = vmatprep.mubr.f32.mxu1 %v2905_v41 }
 0x1ed   :  { %1587 = vmatmul.mubr.msk.f32.gmra.mrb[70].mxu1 %vm296_vm1, %v2055_v61 }
 0x1ee   :  { %1184 = vmatprep.mubr.f32.mxu1 %v2905_v41 }
 0x1f1   :  { %1588 = vmatmul.mubr.msk.f32.gmra.mrb[72].mxu1 %vm296_vm1, %v2069_v0 }
 0x1f2   :  { %1190 = vmatprep.mubr.f32.mxu1 %v2905_v41 }
 0x1f5   :  { %1589 = vmatmul.mubr.msk.f32.gmra.mrb[74].mxu1 %vm296_vm1, %v2083_v4 }
 0x1f6   :  { %1196 = vmatprep.mubr.f32.mxu1 %v2905_v41 }
 0x1f9   :  { %1590 = vmatmul.mubr.msk.f32.gmra.mrb[76].mxu1 %vm296_vm1, %v2097_v7 }
 0x1fa   :  { %1202 = vmatprep.mubr.f32.mxu1 %v2905_v41 }
 0x1fd   :  { %1591 = vmatmul.mubr.msk.f32.gmra.mrb[78].mxu1 %vm296_vm1, %v2111_v10  ;;  %v2631_v10 = vpop.permute.xlu1 %736 }
 0x1fe   :  { %1208 = vmatprep.mubr.f32.mxu1 %v2905_v41 }
 0x201   :  { %1592 = vmatmul.mubr.msk.f32.gmra.mrb[80].mxu1 %vm296_vm1, %v2125_v13  ;;  %v2639_v2 = vpop.permute.xlu1 %746 }
 0x202   :  { %1214 = vmatprep.mubr.f32.mxu1 %v2905_v41 }
 0x205   :  { %1593 = vmatmul.mubr.msk.f32.gmra.mrb[82].mxu1 %vm296_vm1, %v2133_v14 }
 0x206   :  { %1220 = vmatprep.mubr.f32.mxu1 %v2905_v41 }
 0x209   :  { %1594 = vmatmul.mubr.msk.f32.gmra.mrb[84].mxu1 %vm296_vm1, %v2141_v15 }
 0x20a   :  { %1226 = vmatprep.mubr.f32.mxu1 %v2905_v41 }
 0x20d   :  { %1595 = vmatmul.mubr.msk.f32.gmra.mrb[86].mxu1 %vm296_vm1, %v2149_v16 }
 0x20e   :  { %1232 = vmatprep.mubr.f32.mxu1 %v2905_v41 }
 0x211   :  { %1596 = vmatmul.mubr.msk.f32.gmra.mrb[88].mxu1 %vm296_vm1, %v2157_v17  ;;  %v2635_v17 = vpop.permute.xlu0 %741 }
 0x212   :  { %1238 = vmatprep.mubr.f32.mxu1 %v2905_v41 }
 0x215   :  { %1597 = vmatmul.mubr.msk.f32.gmra.mrb[90].mxu1 %vm296_vm1, %v2165_v18 }
 0x216   :  { %1244 = vmatprep.mubr.f32.mxu1 %v2905_v41 }
 0x219   :  { %1598 = vmatmul.mubr.msk.f32.gmra.mrb[92].mxu1 %vm296_vm1, %v2173_v19 }
 0x21a   :  { %1250 = vmatprep.mubr.f32.mxu1 %v2905_v41 }
 0x21d   :  { %1599 = vmatmul.mubr.msk.f32.gmra.mrb[94].mxu1 %vm296_vm1, %v2181_v20 }
 0x234   :  { %v865_v31 = vpop.f32.mrb[0].mxu1 }
 0x235   :  { %v866_v34 = vadd.f32 %v865_v31, %v2619_v28  ;;  %v867_v37 = vpop.f32.mrb[1].mxu1 }
 0x236   :  { %v868_v40 = vadd.f32 %v867_v37, %v2619_v28  ;;  %v2643_v37 = vpop.permute.xlu0 %751 }
 0x237   :  { %960 = vst [vmem:[#allocation2] sm:$0xff] %v866_v34 }
 0x238   :  { %961 = vst [vmem:[#allocation2 + $0x8] sm:$0xff] %v868_v40  ;;  %v871_v46 = vpop.f32.mrb[2].mxu1 }
 0x239   :  { %v872_v49 = vadd.f32 %v871_v46, %v2623_v43  ;;  %v873_v52 = vpop.f32.mrb[3].mxu1 }
 0x23a   :  { %v874_v55 = vadd.f32 %v873_v52, %v2623_v43 }
 0x23b   :  { %962 = vst [vmem:[#allocation2 + $0x10] sm:$0xff] %v872_v49 }
 0x23c   :  { %963 = vst [vmem:[#allocation2 + $0x18] sm:$0xff] %v874_v55  ;;  %v877_v61 = vpop.f32.mrb[4].mxu1  ;;  %v2647_v55 = vpop.permute.xlu1 %756 }
 0x23d   :  { %v878_v0 = vadd.f32 %v877_v61, %v2627_v58  ;;  %v879_v4 = vpop.f32.mrb[5].mxu1 }
 0x23e   :  { %v880_v7 = vadd.f32 %v879_v4, %v2627_v58 }
 0x23f   :  { %964 = vst [vmem:[#allocation2 + $0x20] sm:$0xff] %v878_v0 }
 0x240   :  { %965 = vst [vmem:[#allocation2 + $0x28] sm:$0xff] %v880_v7  ;;  %v883_v13 = vpop.f32.mrb[6].mxu1 }
 0x241   :  { %v884_v14 = vadd.f32 %v883_v13, %v2631_v10  ;;  %v885_v15 = vpop.f32.mrb[7].mxu1  ;;  %v2651_v13 = vpop.permute.xlu0 %761 }
 0x242   :  { %v886_v16 = vadd.f32 %v885_v15, %v2631_v10 }
 0x243   :  { %966 = vst [vmem:[#allocation2 + $0x30] sm:$0xff] %v884_v14 }
 0x244   :  { %967 = vst [vmem:[#allocation2 + $0x38] sm:$0xff] %v886_v16  ;;  %v889_v18 = vpop.f32.mrb[8].mxu1 }
 0x245   :  { %v890_v19 = vadd.f32 %v889_v18, %v2635_v17  ;;  %v891_v20 = vpop.f32.mrb[9].mxu1 }
 0x246   :  { %v892_v41 = vadd.f32 %v891_v20, %v2635_v17 }
 0x247   :  { %968 = vst [vmem:[#allocation2 + $0x40] sm:$0xff] %v890_v19  ;;  %v2655_v19 = vpop.permute.xlu1 %766 }
 0x248   :  { %969 = vst [vmem:[#allocation2 + $0x48] sm:$0xff] %v892_v41  ;;  %v895_v30 = vpop.f32.mrb[10].mxu1 }
 0x249   :  { %v896_v42 = vadd.f32 %v895_v30, %v2639_v2  ;;  %v897_v31 = vpop.f32.mrb[11].mxu1 }
 0x24a   :  { %v898_v34 = vadd.f32 %v897_v31, %v2639_v2  ;;  %v2659_v31 = vpop.permute.xlu0 %771 }
 0x24b   :  { %970 = vst [vmem:[#allocation2 + $0x50] sm:$0xff] %v896_v42  ;;  %2906 = vst [vmem:[#allocation32_spill] sm:$0xff] %v2659_v31 }
 0x24c   :  { %971 = vst [vmem:[#allocation2 + $0x58] sm:$0xff] %v898_v34  ;;  %v901_v40 = vpop.f32.mrb[12].mxu1 }
 0x24d   :  { %v902_v46 = vadd.f32 %v901_v40, %v2643_v37  ;;  %v903_v49 = vpop.f32.mrb[13].mxu1 }
 0x24e   :  { %v904_v52 = vadd.f32 %v903_v49, %v2643_v37 }
 0x24f   :  { %972 = vst [vmem:[#allocation2 + $0x60] sm:$0xff] %v902_v46 }
 0x250   :  { %973 = vst [vmem:[#allocation2 + $0x68] sm:$0xff] %v904_v52  ;;  %v907_v61 = vpop.f32.mrb[14].mxu1  ;;  %v2663_v52 = vpop.permute.xlu1 %776 }
 0x251   :  { %v908_v0 = vadd.f32 %v907_v61, %v2647_v55  ;;  %v909_v4 = vpop.f32.mrb[15].mxu1  ;;  %2907 = vst [vmem:[#allocation33_spill] sm:$0xff] %v2663_v52 }
 0x252   :  { %v910_v7 = vadd.f32 %v909_v4, %v2647_v55 }
 0x253   :  { %974 = vst [vmem:[#allocation2 + $0x70] sm:$0xff] %v908_v0 }
 0x254   :  { %975 = vst [vmem:[#allocation2 + $0x78] sm:$0xff] %v910_v7  ;;  %v913_v14 = vpop.f32.mrb[16].mxu1 }
 0x255   :  { %v914_v15 = vadd.f32 %v913_v14, %v2651_v13  ;;  %v915_v16 = vpop.f32.mrb[17].mxu1  ;;  %v2667_v14 = vpop.permute.xlu0 %781 }
 0x256   :  { %v916_v18 = vadd.f32 %v915_v16, %v2651_v13  ;;  %2908 = vst [vmem:[#allocation34_spill] sm:$0xff] %v2667_v14 }
 0x257   :  { %976 = vst [vmem:[#allocation2 + $0x80] sm:$0xff] %v914_v15 }
 0x258   :  { %977 = vst [vmem:[#allocation2 + $0x88] sm:$0xff] %v916_v18  ;;  %v919_v20 = vpop.f32.mrb[18].mxu1 }
 0x259   :  { %v920_v41 = vadd.f32 %v919_v20, %v2655_v19  ;;  %v921_v30 = vpop.f32.mrb[19].mxu1 }
 0x25a   :  { %v922_v42 = vadd.f32 %v921_v30, %v2655_v19 }
 0x25b   :  { %978 = vst [vmem:[#allocation2 + $0x90] sm:$0xff] %v920_v41  ;;  %v2671_v41 = vpop.permute.xlu1 %786 }
 0x25c   :  { %979 = vst [vmem:[#allocation2 + $0x98] sm:$0xff] %v922_v42  ;;  %v925_v34 = vpop.f32.mrb[20].mxu1  ;;  %2909 = vst [vmem:[#allocation35_spill] sm:$0xff] %v2671_v41 }
 0x25d   :  { %v926_v40 = vadd.f32 %v925_v34, %v2659_v31  ;;  %v927_v46 = vpop.f32.mrb[21].mxu1 }
 0x25e   :  { %v928_v49 = vadd.f32 %v927_v46, %v2659_v31  ;;  %v2675_v46 = vpop.permute.xlu0 %791 }
 0x25f   :  { %980 = vst [vmem:[#allocation2 + $0xa0] sm:$0xff] %v926_v40  ;;  %2910 = vst [vmem:[#allocation36_spill] sm:$0xff] %v2675_v46 }
 0x260   :  { %981 = vst [vmem:[#allocation2 + $0xa8] sm:$0xff] %v928_v49  ;;  %v931_v61 = vpop.f32.mrb[22].mxu1 }
 0x261   :  { %v932_v0 = vadd.f32 %v931_v61, %v2663_v52  ;;  %v933_v4 = vpop.f32.mrb[23].mxu1 }
 0x262   :  { %v934_v7 = vadd.f32 %v933_v4, %v2663_v52 }
 0x263   :  { %982 = vst [vmem:[#allocation2 + $0xb0] sm:$0xff] %v932_v0 }
 0x264   :  { %983 = vst [vmem:[#allocation2 + $0xb8] sm:$0xff] %v934_v7  ;;  %v937_v15 = vpop.f32.mrb[24].mxu1  ;;  %v2679_v7 = vpop.permute.xlu1 %796 }
 0x265   :  { %v938_v16 = vadd.f32 %v937_v15, %v2667_v14  ;;  %v939_v18 = vpop.f32.mrb[25].mxu1  ;;  %2911 = vst [vmem:[#allocation37_spill] sm:$0xff] %v2679_v7 }
 0x266   :  { %v940_v20 = vadd.f32 %v939_v18, %v2667_v14 }
 0x267   :  { %984 = vst [vmem:[#allocation2 + $0xc0] sm:$0xff] %v938_v16 }
 0x268   :  { %985 = vst [vmem:[#allocation2 + $0xc8] sm:$0xff] %v940_v20  ;;  %v943_v30 = vpop.f32.mrb[26].mxu1 }
 0x269   :  { %v944_v42 = vadd.f32 %v943_v30, %v2671_v41  ;;  %v945_v34 = vpop.f32.mrb[27].mxu1 }
 0x26a   :  { %v946_v40 = vadd.f32 %v945_v34, %v2671_v41 }
 0x26b   :  { %986 = vst [vmem:[#allocation2 + $0xd0] sm:$0xff] %v944_v42 }
 0x26c   :  { %987 = vst [vmem:[#allocation2 + $0xd8] sm:$0xff] %v946_v40  ;;  %v949_v49 = vpop.f32.mrb[28].mxu1 }
 0x26d   :  { %v950_v61 = vadd.f32 %v949_v49, %v2675_v46  ;;  %v951_v0 = vpop.f32.mrb[29].mxu1 }
 0x26e   :  { %v952_v4 = vadd.f32 %v951_v0, %v2675_v46 }
 0x26f   :  { %988 = vst [vmem:[#allocation2 + $0xe0] sm:$0xff] %v950_v61 }
 0x270   :  { %989 = vst [vmem:[#allocation2 + $0xe8] sm:$0xff] %v952_v4  ;;  %v955_v15 = vpop.f32.mrb[30].mxu1 }
 0x271   :  { %v956_v16 = vadd.f32 %v955_v15, %v2679_v7  ;;  %v957_v18 = vpop.f32.mrb[31].mxu1 }
 0x272   :  { %v958_v20 = vadd.f32 %v957_v18, %v2679_v7 }
 0x273   :  { %990 = vst [vmem:[#allocation2 + $0xf0] sm:$0xff] %v956_v16 }
 0x274   :  { %991 = vst [vmem:[#allocation2 + $0xf8] sm:$0xff] %v958_v20  ;;  %v1066_v30 = vpop.f32.mrb[32].mxu1 }
 0x275   :  { %v1068_v42 = vpop.f32.mrb[33].mxu1  ;;  %v1067_v34 = vadd.f32 %v1066_v30, %v2185_v21 }
 0x276   :  { %v1069_v40 = vadd.f32 %v1068_v42, %v2185_v21 }
 0x277   :  { %v1257_v46 = vmax.f32 %v1067_v34, 0.0 }
 0x278   :  { %v1072_v49 = vpop.f32.mrb[34].mxu1  ;;  %v1258_v15 = vmax.f32 %v1069_v40, 0.0 }
 0x279   :  { %v1073_v61 = vadd.f32 %v1072_v49, %v2188_v25  ;;  %v1074_v0 = vpop.f32.mrb[35].mxu1 }
 0x27a   :  { %v1075_v4 = vadd.f32 %v1074_v0, %v2188_v25 }
 0x27b   :  { %v1259_v41 = vmax.f32 %v1073_v61, 0.0 }
 0x27c   :  { %v1260_v14 = vmax.f32 %v1075_v4, 0.0  ;;  %v1078_v52 = vpop.f32.mrb[36].mxu1 }
 0x27d   :  { %v1666_v18 = vpack.c.bf16 %v1259_v41, %v1257_v46  ;;  %v1080_v16 = vpop.f32.mrb[37].mxu1  ;;  %v1079_v7 = vadd.f32 %v1078_v52, %v2195_v33 }
 0x27e   :  { %v1664_v20 = vpack.c.bf16 %v1260_v14, %v1258_v15  ;;  %v1081_v30 = vadd.f32 %v1080_v16, %v2195_v33 }
 0x27f   :  { %v1261_v34 = vmax.f32 %v1079_v7, 0.0 }
 0x280   :  { %v1084_v31 = vpop.f32.mrb[38].mxu1  ;;  %1665 = vmatprep.subr.bf16.mxu0 %v1664_v20  ;;  %v1262_v40 = vmax.f32 %v1081_v30, 0.0 }
 0x281   :  { %v1085_v21 = vadd.f32 %v1084_v31, %v2199_v50  ;;  %v1086_v42 = vpop.f32.mrb[39].mxu1  ;;  %1667 = vmatpush1.bf16.msra.mxu0 %v1666_v18 }
 0x282   :  { %v1087_v25 = vadd.f32 %v1086_v42, %v2199_v50 }
 0x283   :  { %v1263_v49 = vmax.f32 %v1085_v21, 0.0 }
 0x284   :  { %v1264_v61 = vmax.f32 %v1087_v25, 0.0  ;;  %v1090_v0 = vpop.f32.mrb[40].mxu1 }
 0x285   :  { %v1670_v41 = vpack.c.bf16 %v1263_v49, %v1261_v34  ;;  %v1092_v46 = vpop.f32.mrb[41].mxu1  ;;  %v1091_v52 = vadd.f32 %v1090_v0, %v2204_v6 }
 0x286   :  { %v1668_v14 = vpack.c.bf16 %v1264_v61, %v1262_v40  ;;  %v1093_v33 = vadd.f32 %v1092_v46, %v2204_v6 }
 0x287   :  { %v1265_v7 = vmax.f32 %v1091_v52, 0.0 }
 0x288   :  { %v1096_v4 = vpop.f32.mrb[42].mxu1  ;;  %1669 = vmatprep.subr.bf16.mxu0 %v1668_v14  ;;  %v1266_v16 = vmax.f32 %v1093_v33, 0.0 }
 0x289   :  { %v1097_v31 = vadd.f32 %v1096_v4, %v2207_v11  ;;  %v1098_v15 = vpop.f32.mrb[43].mxu1  ;;  %1671 = vmatpush1.bf16.msra.mxu0 %v1670_v41 }
 0x28a   :  { %v1099_v50 = vadd.f32 %v1098_v15, %v2207_v11 }
 0x28b   :  { %v1267_v18 = vmax.f32 %v1097_v31, 0.0 }
 0x28c   :  { %v1268_v20 = vmax.f32 %v1099_v50, 0.0  ;;  %v1102_v30 = vpop.f32.mrb[44].mxu1 }
 0x28d   :  { %v1674_v21 = vpack.c.bf16 %v1267_v18, %v1265_v7  ;;  %v1104_v42 = vpop.f32.mrb[45].mxu1  ;;  %v1103_v34 = vadd.f32 %v1102_v30, %v2212_v39 }
 0x28e   :  { %v1672_v25 = vpack.c.bf16 %v1268_v20, %v1266_v16  ;;  %v1105_v6 = vadd.f32 %v1104_v42, %v2212_v39 }
 0x28f   :  { %v1269_v0 = vmax.f32 %v1103_v34, 0.0 }
 0x290   :  { %v1108_v49 = vpop.f32.mrb[46].mxu1  ;;  %1673 = vmatprep.subr.bf16.mxu0 %v1672_v25  ;;  %v1270_v46 = vmax.f32 %v1105_v6, 0.0 }
 0x291   :  { %v1109_v40 = vadd.f32 %v1108_v49, %v2215_v44  ;;  %v1110_v61 = vpop.f32.mrb[47].mxu1  ;;  %1675 = vmatpush1.bf16.msra.mxu0 %v1674_v21 }
 0x292   :  { %v1111_v11 = vadd.f32 %v1110_v61, %v2215_v44 }
 0x293   :  { %v1271_v41 = vmax.f32 %v1109_v40, 0.0 }
 0x294   :  { %v1272_v14 = vmax.f32 %v1111_v11, 0.0  ;;  %v1114_v52 = vpop.f32.mrb[48].mxu1 }
 0x295   :  { %v1678_v33 = vpack.c.bf16 %v1271_v41, %v1269_v0  ;;  %v1116_v4 = vpop.f32.mrb[49].mxu1  ;;  %v1115_v15 = vadd.f32 %v1114_v52, %v2220_v1 }
 0x296   :  { %v1676_v31 = vpack.c.bf16 %v1272_v14, %v1270_v46  ;;  %v1117_v39 = vadd.f32 %v1116_v4, %v2220_v1 }
 0x297   :  { %v1273_v16 = vmax.f32 %v1115_v15, 0.0 }
 0x298   :  { %v1120_v50 = vpop.f32.mrb[50].mxu1  ;;  %1677 = vmatprep.subr.bf16.mxu0 %v1676_v31  ;;  %v1274_v30 = vmax.f32 %v1117_v39, 0.0 }
 0x299   :  { %v1121_v7 = vadd.f32 %v1120_v50, %v2223_v8  ;;  %v1122_v18 = vpop.f32.mrb[51].mxu1  ;;  %1679 = vmatpush1.bf16.msra.mxu0 %v1678_v33 }
 0x29a   :  { %v1123_v44 = vadd.f32 %v1122_v18, %v2223_v8 }
 0x29b   :  { %v1275_v20 = vmax.f32 %v1121_v7, 0.0 }
 0x29c   :  { %v1276_v21 = vmax.f32 %v1123_v44, 0.0  ;;  %v1126_v42 = vpop.f32.mrb[52].mxu1 }
 0x29d   :  { %v1682_v25 = vpack.c.bf16 %v1275_v20, %v1273_v16  ;;  %v1128_v34 = vpop.f32.mrb[53].mxu1  ;;  %v1127_v49 = vadd.f32 %v1126_v42, %v2228_v38 }
 0x29e   :  { %v1680_v6 = vpack.c.bf16 %v1276_v21, %v1274_v30  ;;  %v1129_v1 = vadd.f32 %v1128_v34, %v2228_v38 }
 0x29f   :  { %v1277_v0 = vmax.f32 %v1127_v49, 0.0 }
 0x2a0   :  { %v1132_v40 = vpop.f32.mrb[54].mxu1  ;;  %1681 = vmatprep.subr.bf16.mxu0 %v1680_v6  ;;  %v1278_v46 = vmax.f32 %v1129_v1, 0.0 }
 0x2a1   :  { %v1133_v61 = vadd.f32 %v1132_v40, %v2231_v45  ;;  %v1134_v11 = vpop.f32.mrb[55].mxu1  ;;  %1683 = vmatpush1.bf16.msra.mxu0 %v1682_v25 }
 0x2a2   :  { %v1135_v8 = vadd.f32 %v1134_v11, %v2231_v45 }
 0x2a3   :  { %v1279_v41 = vmax.f32 %v1133_v61, 0.0 }
 0x2a4   :  { %v1280_v14 = vmax.f32 %v1135_v8, 0.0  ;;  %v1138_v52 = vpop.f32.mrb[56].mxu1 }
 0x2a5   :  { %v1686_v33 = vpack.c.bf16 %v1279_v41, %v1277_v0  ;;  %v1140_v4 = vpop.f32.mrb[57].mxu1  ;;  %v1139_v15 = vadd.f32 %v1138_v52, %v2236_v5 }
 0x2a6   :  { %v1684_v31 = vpack.c.bf16 %v1280_v14, %v1278_v46  ;;  %v1141_v38 = vadd.f32 %v1140_v4, %v2236_v5 }
 0x2a7   :  { %v1281_v18 = vmax.f32 %v1139_v15, 0.0 }
 0x2a8   :  { %v1144_v39 = vpop.f32.mrb[58].mxu1  ;;  %1685 = vmatprep.subr.bf16.mxu0 %v1684_v31  ;;  %v1282_v16 = vmax.f32 %v1141_v38, 0.0 }
 0x2a9   :  { %v1145_v50 = vadd.f32 %v1144_v39, %v2239_v22  ;;  %v1146_v7 = vpop.f32.mrb[59].mxu1  ;;  %1687 = vmatpush1.bf16.msra.mxu0 %v1686_v33 }
 0x2aa   :  { %v1147_v45 = vadd.f32 %v1146_v7, %v2239_v22 }
 0x2ab   :  { %v1283_v44 = vmax.f32 %v1145_v50, 0.0 }
 0x2ac   :  { %v1284_v20 = vmax.f32 %v1147_v45, 0.0  ;;  %v1150_v30 = vpop.f32.mrb[60].mxu1 }
 0x2ad   :  { %v1690_v21 = vpack.c.bf16 %v1283_v44, %v1281_v18  ;;  %v1152_v42 = vpop.f32.mrb[61].mxu1  ;;  %v1151_v34 = vadd.f32 %v1150_v30, %v2244_v48 }
 0x2ae   :  { %v1688_v25 = vpack.c.bf16 %v1284_v20, %v1282_v16  ;;  %v1153_v5 = vadd.f32 %v1152_v42, %v2244_v48 }
 0x2af   :  { %v1285_v40 = vmax.f32 %v1151_v34, 0.0 }
 0x2b0   :  { %v1156_v6 = vpop.f32.mrb[62].mxu1  ;;  %1689 = vmatprep.subr.bf16.mxu0 %v1688_v25  ;;  %v1286_v11 = vmax.f32 %v1153_v5, 0.0 }
 0x2b1   :  { %v1157_v49 = vadd.f32 %v1156_v6, %v2247_v54  ;;  %v1158_v1 = vpop.f32.mrb[63].mxu1  ;;  %1691 = vmatpush1.bf16.msra.mxu0 %v1690_v21 }
 0x2b2   :  { %v1159_v22 = vadd.f32 %v1158_v1, %v2247_v54 }
 0x2b3   :  { %v1287_v61 = vmax.f32 %v1157_v49, 0.0 }
 0x2b4   :  { %v1288_v8 = vmax.f32 %v1159_v22, 0.0  ;;  %v1162_v0 = vpop.f32.mrb[64].mxu1 }
 0x2b5   :  { %v1694_v41 = vpack.c.bf16 %v1287_v61, %v1285_v40  ;;  %v1164_v46 = vpop.f32.mrb[65].mxu1  ;;  %v1163_v52 = vadd.f32 %v1162_v0, %v2252_v27  ;;  %v2912_v40 = vld [vmem:[#allocation5_spill] sm:$0xff] }
 0x2b6   :  { %v1692_v14 = vpack.c.bf16 %v1288_v8, %v1286_v11  ;;  %v1165_v48 = vadd.f32 %v1164_v46, %v2252_v27  ;;  %v2913_v8 = vld [vmem:[#allocation6_spill] sm:$0xff] }
 0x2b7   :  { %v1289_v15 = vmax.f32 %v1163_v52, 0.0 }
 0x2b8   :  { %v1168_v33 = vpop.f32.mrb[66].mxu1  ;;  %1693 = vmatprep.subr.bf16.mxu0 %v1692_v14  ;;  %v1290_v39 = vmax.f32 %v1165_v48, 0.0 }
 0x2b9   :  { %v1169_v4 = vadd.f32 %v1168_v33, %v2255_v32  ;;  %v1170_v31 = vpop.f32.mrb[67].mxu1  ;;  %1695 = vmatpush1.bf16.msra.mxu0 %v1694_v41 }
 0x2ba   :  { %v1171_v54 = vadd.f32 %v1170_v31, %v2255_v32 }
 0x2bb   :  { %v1291_v38 = vmax.f32 %v1169_v4, 0.0 }
 0x2bc   :  { %v1292_v50 = vmax.f32 %v1171_v54, 0.0  ;;  %v1174_v7 = vpop.f32.mrb[68].mxu1 }
 0x2bd   :  { %v1698_v45 = vpack.c.bf16 %v1291_v38, %v1289_v15  ;;  %v1176_v18 = vpop.f32.mrb[69].mxu1  ;;  %v1175_v16 = vadd.f32 %v1174_v7, %v2260_v63  ;;  %v2914_v15 = vld [vmem:[#allocation7_spill] sm:$0xff]  ;;  %v2915_v7 = vld [vmem:[#allocation8_spill] sm:$0xff] }
 0x2be   :  { %v1696_v44 = vpack.c.bf16 %v1292_v50, %v1290_v39  ;;  %v1177_v27 = vadd.f32 %v1176_v18, %v2260_v63 }
 0x2bf   :  { %v1293_v42 = vmax.f32 %v1175_v16, 0.0 }
 0x2c0   :  { %v1180_v20 = vpop.f32.mrb[70].mxu1  ;;  %1697 = vmatprep.subr.bf16.mxu0 %v1696_v44  ;;  %v1294_v34 = vmax.f32 %v1177_v27, 0.0 }
 0x2c1   :  { %v1181_v30 = vadd.f32 %v1180_v20, %v2263_v12  ;;  %v1182_v21 = vpop.f32.mrb[71].mxu1  ;;  %1699 = vmatpush1.bf16.msra.mxu0 %v1698_v45 }
 0x2c2   :  { %v1183_v32 = vadd.f32 %v1182_v21, %v2263_v12 }
 0x2c3   :  { %v1295_v25 = vmax.f32 %v1181_v30, 0.0 }
 0x2c4   :  { %v1296_v5 = vmax.f32 %v1183_v32, 0.0  ;;  %v1186_v6 = vpop.f32.mrb[72].mxu1 }
 0x2c5   :  { %v1702_v49 = vpack.c.bf16 %v1295_v25, %v1293_v42  ;;  %v1188_v1 = vpop.f32.mrb[73].mxu1  ;;  %v1187_v61 = vadd.f32 %v1186_v6, %v2912_v40 }
 0x2c6   :  { %v1700_v22 = vpack.c.bf16 %v1296_v5, %v1294_v34  ;;  %v1189_v63 = vadd.f32 %v1188_v1, %v2912_v40  ;;  %v2916_v34 = vld [vmem:[#allocation9_spill] sm:$0xff]  ;;  %v2917_v1 = vld [vmem:[#allocation10_spill] sm:$0xff] }
 0x2c7   :  { %v1297_v46 = vmax.f32 %v1187_v61, 0.0 }
 0x2c8   :  { %v1192_v11 = vpop.f32.mrb[74].mxu1  ;;  %1701 = vmatprep.subr.bf16.mxu0 %v1700_v22  ;;  %v1298_v52 = vmax.f32 %v1189_v63, 0.0 }
 0x2c9   :  { %v1193_v0 = vadd.f32 %v1192_v11, %v2913_v8  ;;  %v1194_v41 = vpop.f32.mrb[75].mxu1  ;;  %1703 = vmatpush1.bf16.msra.mxu0 %v1702_v49 }
 0x2ca   :  { %v1195_v12 = vadd.f32 %v1194_v41, %v2913_v8 }
 0x2cb   :  { %v1299_v14 = vmax.f32 %v1193_v0, 0.0 }
 0x2cc   :  { %v1300_v48 = vmax.f32 %v1195_v12, 0.0  ;;  %v1198_v33 = vpop.f32.mrb[76].mxu1 }
 0x2cd   :  { %v1706_v4 = vpack.c.bf16 %v1299_v14, %v1297_v46  ;;  %v1200_v31 = vpop.f32.mrb[77].mxu1  ;;  %v1199_v38 = vadd.f32 %v1198_v33, %v2914_v15 }
 0x2ce   :  { %v1704_v54 = vpack.c.bf16 %v1300_v48, %v1298_v52  ;;  %v1201_v39 = vadd.f32 %v1200_v31, %v2914_v15  ;;  %v2918_v52 = vld [vmem:[#allocation11_spill] sm:$0xff]  ;;  %v2919_v31 = vld [vmem:[#allocation12_spill] sm:$0xff] }
 0x2cf   :  { %v1301_v16 = vmax.f32 %v1199_v38, 0.0 }
 0x2d0   :  { %v1204_v50 = vpop.f32.mrb[78].mxu1  ;;  %1705 = vmatprep.subr.bf16.mxu0 %v1704_v54  ;;  %v1302_v20 = vmax.f32 %v1201_v39, 0.0 }
 0x2d1   :  { %v1205_v45 = vadd.f32 %v1204_v50, %v2915_v7  ;;  %v1206_v18 = vpop.f32.mrb[79].mxu1  ;;  %1707 = vmatpush1.bf16.msra.mxu0 %v1706_v4 }
 0x2d2   :  { %v1207_v44 = vadd.f32 %v1206_v18, %v2915_v7 }
 0x2d3   :  { %v1303_v27 = vmax.f32 %v1205_v45, 0.0 }
 0x2d4   :  { %v1304_v30 = vmax.f32 %v1207_v44, 0.0  ;;  %v1210_v21 = vpop.f32.mrb[80].mxu1 }
 0x2d5   :  { %v1710_v32 = vpack.c.bf16 %v1303_v27, %v1301_v16  ;;  %v1212_v42 = vpop.f32.mrb[81].mxu1  ;;  %v1211_v5 = vadd.f32 %v1210_v21, %v2916_v34 }
 0x2d6   :  { %v1708_v25 = vpack.c.bf16 %v1304_v30, %v1302_v20  ;;  %v1213_v6 = vadd.f32 %v1212_v42, %v2916_v34  ;;  %v2920_v20 = vld [vmem:[#allocation13_spill] sm:$0xff] }
 0x2d7   :  { %v1305_v63 = vmax.f32 %v1211_v5, 0.0 }
 0x2d8   :  { %v1216_v49 = vpop.f32.mrb[82].mxu1  ;;  %1709 = vmatprep.subr.bf16.mxu0 %v1708_v25  ;;  %v1306_v8 = vmax.f32 %v1213_v6, 0.0 }
 0x2d9   :  { %v1217_v22 = vadd.f32 %v1216_v49, %v2917_v1  ;;  %v1218_v40 = vpop.f32.mrb[83].mxu1  ;;  %1711 = vmatpush1.bf16.msra.mxu0 %v1710_v32 }
 0x2da   :  { %v1219_v61 = vadd.f32 %v1218_v40, %v2917_v1 }
 0x2db   :  { %v1307_v11 = vmax.f32 %v1217_v22, 0.0 }
 0x2dc   :  { %v1308_v0 = vmax.f32 %v1219_v61, 0.0  ;;  %v1222_v41 = vpop.f32.mrb[84].mxu1 }
 0x2dd   :  { %v1714_v12 = vpack.c.bf16 %v1307_v11, %v1305_v63  ;;  %v1224_v46 = vpop.f32.mrb[85].mxu1  ;;  %v1223_v48 = vadd.f32 %v1222_v41, %v2918_v52 }
 0x2de   :  { %v1712_v14 = vpack.c.bf16 %v1308_v0, %v1306_v8  ;;  %v1225_v33 = vadd.f32 %v1224_v46, %v2918_v52 }
 0x2df   :  { %v1309_v39 = vmax.f32 %v1223_v48, 0.0 }
 0x2e0   :  { %v1228_v4 = vpop.f32.mrb[86].mxu1  ;;  %1713 = vmatprep.subr.bf16.mxu0 %v1712_v14  ;;  %v1310_v7 = vmax.f32 %v1225_v33, 0.0 }
 0x2e1   :  { %v1229_v54 = vadd.f32 %v1228_v4, %v2919_v31  ;;  %v1230_v15 = vpop.f32.mrb[87].mxu1  ;;  %1715 = vmatpush1.bf16.msra.mxu0 %v1714_v12 }
 0x2e2   :  { %v1231_v38 = vadd.f32 %v1230_v15, %v2919_v31  ;;  %v2935_v31 = vld [vmem:[#allocation28_spill] sm:$0xff]  ;;  %v2937_v15 = vld [vmem:[#allocation30_spill] sm:$0xff] }
 0x2e3   :  { %v1311_v50 = vmax.f32 %v1229_v54, 0.0  ;;  %v2936_v54 = vld [vmem:[#allocation29_spill] sm:$0xff] }
 0x2e4   :  { %v1312_v45 = vmax.f32 %v1231_v38, 0.0  ;;  %v1234_v18 = vpop.f32.mrb[88].mxu1  ;;  %v2938_v38 = vld [vmem:[#allocation31_spill] sm:$0xff] }
 0x2e5   :  { %v1718_v44 = vpack.c.bf16 %v1311_v50, %v1309_v39  ;;  %v1236_v16 = vpop.f32.mrb[89].mxu1  ;;  %v1235_v30 = vadd.f32 %v1234_v18, %v2920_v20 }
 0x2e6   :  { %v1716_v27 = vpack.c.bf16 %v1312_v45, %v1310_v7  ;;  %v1237_v21 = vadd.f32 %v1236_v16, %v2920_v20 }
 0x2e7   :  { %v1313_v5 = vmax.f32 %v1235_v30, 0.0 }
 0x2e8   :  { %v1240_v32 = vpop.f32.mrb[90].mxu1  ;;  %1717 = vmatprep.subr.bf16.mxu0 %v1716_v27  ;;  %v1314_v49 = vmax.f32 %v1237_v21, 0.0 }
 0x2e9   :  { %v1241_v42 = vadd.f32 %v1240_v32, %v2303_v29  ;;  %v1242_v25 = vpop.f32.mrb[91].mxu1  ;;  %1719 = vmatpush1.bf16.msra.mxu0 %v1718_v44 }
 0x2ea   :  { %v1243_v34 = vadd.f32 %v1242_v25, %v2303_v29 }
 0x2eb   :  { %v1315_v6 = vmax.f32 %v1241_v42, 0.0 }
 0x2ec   :  { %v1316_v1 = vmax.f32 %v1243_v34, 0.0  ;;  %v1246_v22 = vpop.f32.mrb[92].mxu1 }
 0x2ed   :  { %v1722_v40 = vpack.c.bf16 %v1315_v6, %v1313_v5  ;;  %v1248_v61 = vpop.f32.mrb[93].mxu1  ;;  %v1247_v11 = vadd.f32 %v1246_v22, %v2308_v59 }
 0x2ee   :  { %v1720_v63 = vpack.c.bf16 %v1316_v1, %v1314_v49  ;;  %v1249_v8 = vadd.f32 %v1248_v61, %v2308_v59  ;;  %v2922_v59 = vld [vmem:[#allocation15_spill] sm:$0xff] }
 0x2ef   :  { %v1317_v46 = vmax.f32 %v1247_v11, 0.0 }
 0x2f0   :  { %v1252_v0 = vpop.f32.mrb[94].mxu1  ;;  %1721 = vmatprep.subr.bf16.mxu0 %v1720_v63  ;;  %v1318_v52 = vmax.f32 %v1249_v8, 0.0 }
 0x2f1   :  { %v1253_v41 = vadd.f32 %v1252_v0, %v2311_v9  ;;  %v1254_v12 = vpop.f32.mrb[95].mxu1  ;;  %1723 = vmatpush1.bf16.msra.mxu0 %v1722_v40 }
 0x2f2   :  { %v1255_v29 = vadd.f32 %v1254_v12, %v2311_v9  ;;  %v2921_v9 = vld [vmem:[#allocation14_spill] sm:$0xff] }
 0x2f3   :  { %v1319_v14 = vmax.f32 %v1253_v41, 0.0 }
 0x2f4   :  { %v1320_v48 = vmax.f32 %v1255_v29, 0.0 }
 0x2f5   :  { %v1726_v33 = vpack.c.bf16 %v1319_v14, %v1317_v46 }
 0x2f6   :  { %v1724_v4 = vpack.c.bf16 %v1320_v48, %v1318_v52 }
 0x2f8   :  { %1725 = vmatprep.subr.bf16.mxu0 %v1724_v4 }
 0x2f9   :  { %1727 = vmatpush1.bf16.msra.mxu0 %v1726_v33 }
 0x2fc   :  { %1386 = vmatmul.mubr.f32.vlgmr.msra.gmra.mrb[64].mxu0 %v2322_v36  ;;  %v2923_v36 = vld [vmem:[#allocation16_spill] sm:$0xff] }
 0x2fd   :  { %1391 = vmatprep.mubr.f32.mxu0 %v2327_v57  ;;  %v2924_v57 = vld [vmem:[#allocation17_spill] sm:$0xff] }
 0x300   :  { %1392 = vmatmul.mubr.f32.gmra.mrb[66].mxu0 %v2335_v51  ;;  %v2925_v51 = vld [vmem:[#allocation18_spill] sm:$0xff] }
 0x301   :  { %1397 = vmatprep.mubr.f32.mxu0 %v2341_v60  ;;  %v2926_v60 = vld [vmem:[#allocation19_spill] sm:$0xff] }
 0x304   :  { %1398 = vmatmul.mubr.f32.gmra.mrb[68].mxu0 %v2348_v47  ;;  %v2927_v47 = vld [vmem:[#allocation20_spill] sm:$0xff] }
 0x305   :  { %1403 = vmatprep.mubr.f32.mxu0 %v2353_v26  ;;  %v2928_v26 = vld [vmem:[#allocation21_spill] sm:$0xff] }
 0x308   :  { %1404 = vmatmul.mubr.f32.gmra.mrb[70].mxu0 %v2360_v3  ;;  %v2929_v3 = vld [vmem:[#allocation22_spill] sm:$0xff] }
 0x309   :  { %1409 = vmatprep.mubr.f32.mxu0 %v2365_v24  ;;  %v2930_v24 = vld [vmem:[#allocation23_spill] sm:$0xff] }
 0x30c   :  { %1410 = vmatmul.mubr.f32.gmra.mrb[72].mxu0 %v2372_v56  ;;  %v2931_v56 = vld [vmem:[#allocation24_spill] sm:$0xff] }
 0x30d   :  { %1415 = vmatprep.mubr.f32.mxu0 %v2377_v23  ;;  %v2932_v23 = vld [vmem:[#allocation25_spill] sm:$0xff] }
 0x310   :  { %1416 = vmatmul.mubr.f32.gmra.mrb[74].mxu0 %v2384_v35  ;;  %v2933_v35 = vld [vmem:[#allocation26_spill] sm:$0xff] }
 0x311   :  { %1421 = vmatprep.mubr.f32.mxu0 %v2389_v62  ;;  %v2934_v62 = vld [vmem:[#allocation27_spill] sm:$0xff] }
 0x314   :  { %1422 = vmatmul.mubr.f32.gmra.mrb[76].mxu0 %v2921_v9 }
 0x315   :  { %1427 = vmatprep.mubr.f32.mxu0 %v2922_v59 }
 0x318   :  { %1428 = vmatmul.mubr.f32.gmra.mrb[78].mxu0 %v2923_v36 }
 0x319   :  { %1433 = vmatprep.mubr.f32.mxu0 %v2924_v57 }
 0x31c   :  { %1434 = vmatmul.mubr.f32.gmra.mrb[80].mxu0 %v2925_v51 }
 0x31d   :  { %1439 = vmatprep.mubr.f32.mxu0 %v2926_v60 }
 0x320   :  { %1440 = vmatmul.mubr.f32.gmra.mrb[82].mxu0 %v2927_v47 }
 0x321   :  { %1445 = vmatprep.mubr.f32.mxu0 %v2928_v26 }
 0x324   :  { %1446 = vmatmul.mubr.f32.gmra.mrb[84].mxu0 %v2929_v3 }
 0x325   :  { %1451 = vmatprep.mubr.f32.mxu0 %v2930_v24 }
 0x328   :  { %1452 = vmatmul.mubr.f32.gmra.mrb[86].mxu0 %v2931_v56  ;;  %v2942_v56 = vld [vmem:[#allocation35_spill] sm:$0xff] }
 0x329   :  { %1457 = vmatprep.mubr.f32.mxu0 %v2932_v23 }
 0x32c   :  { %1458 = vmatmul.mubr.f32.gmra.mrb[88].mxu0 %v2933_v35 }
 0x32d   :  { %1463 = vmatprep.mubr.f32.mxu0 %v2934_v62 }
 0x330   :  { %1464 = vmatmul.mubr.f32.gmra.mrb[90].mxu0 %v2935_v31 }
 0x331   :  { %1469 = vmatprep.mubr.f32.mxu0 %v2936_v54  ;;  %v2943_v54 = vld [vmem:[#allocation36_spill] sm:$0xff] }
 0x334   :  { %1470 = vmatmul.mubr.f32.gmra.mrb[92].mxu0 %v2492_v53 }
 0x335   :  { %1475 = vmatprep.mubr.f32.mxu0 %v2937_v15 }
 0x338   :  { %1476 = vmatmul.mubr.f32.gmra.mrb[94].mxu0 %v2938_v38 }
 0x3cf   :  { %v1387_v39 = vpop.f32.mrb[64].mxu0 }
 0x3d0   :  { %v1388_v50 = vadd.f32 %v1387_v39, %v2619_v28  ;;  %v1389_v7 = vpop.f32.mrb[65].mxu0 }
 0x3d1   :  { %v1390_v45 = vadd.f32 %v1389_v7, %v2619_v28  ;;  %v2944_v7 = vld [vmem:[#allocation37_spill] sm:$0xff] }
 0x3d2   :  { %1483 = vst [vmem:[#allocation2 + $0x100] sm:$0xff] %v1388_v50 }
 0x3d3   :  { %1484 = vst [vmem:[#allocation2 + $0x108] sm:$0xff] %v1390_v45  ;;  %v1393_v18 = vpop.f32.mrb[66].mxu0 }
 0x3d4   :  { %v1394_v44 = vadd.f32 %v1393_v18, %v2623_v43  ;;  %v1395_v16 = vpop.f32.mrb[67].mxu0 }
 0x3d5   :  { %v1396_v27 = vadd.f32 %v1395_v16, %v2623_v43 }
 0x3d6   :  { %1485 = vst [vmem:[#allocation2 + $0x110] sm:$0xff] %v1394_v44 }
 0x3d7   :  { %1486 = vst [vmem:[#allocation2 + $0x118] sm:$0xff] %v1396_v27  ;;  %v1399_v53 = vpop.f32.mrb[68].mxu0 }
 0x3d8   :  { %v1400_v20 = vadd.f32 %v1399_v53, %v2627_v58  ;;  %v1401_v30 = vpop.f32.mrb[69].mxu0 }
 0x3d9   :  { %v1402_v21 = vadd.f32 %v1401_v30, %v2627_v58 }
 0x3da   :  { %1487 = vst [vmem:[#allocation2 + $0x120] sm:$0xff] %v1400_v20 }
 0x3db   :  { %1488 = vst [vmem:[#allocation2 + $0x128] sm:$0xff] %v1402_v21  ;;  %v1405_v32 = vpop.f32.mrb[70].mxu0 }
 0x3dc   :  { %v1406_v28 = vadd.f32 %v1405_v32, %v2631_v10  ;;  %v1407_v42 = vpop.f32.mrb[71].mxu0 }
 0x3dd   :  { %v1408_v25 = vadd.f32 %v1407_v42, %v2631_v10 }
 0x3de   :  { %1489 = vst [vmem:[#allocation2 + $0x130] sm:$0xff] %v1406_v28 }
 0x3df   :  { %1490 = vst [vmem:[#allocation2 + $0x138] sm:$0xff] %v1408_v25  ;;  %v1411_v34 = vpop.f32.mrb[72].mxu0 }
 0x3e0   :  { %v1412_v43 = vadd.f32 %v1411_v34, %v2635_v17  ;;  %v1413_v5 = vpop.f32.mrb[73].mxu0 }
 0x3e1   :  { %v1414_v6 = vadd.f32 %v1413_v5, %v2635_v17 }
 0x3e2   :  { %1491 = vst [vmem:[#allocation2 + $0x140] sm:$0xff] %v1412_v43 }
 0x3e3   :  { %1492 = vst [vmem:[#allocation2 + $0x148] sm:$0xff] %v1414_v6  ;;  %v1417_v49 = vpop.f32.mrb[74].mxu0 }
 0x3e4   :  { %v1418_v58 = vadd.f32 %v1417_v49, %v2639_v2  ;;  %v1419_v1 = vpop.f32.mrb[75].mxu0 }
 0x3e5   :  { %v1420_v22 = vadd.f32 %v1419_v1, %v2639_v2 }
 0x3e6   :  { %1493 = vst [vmem:[#allocation2 + $0x150] sm:$0xff] %v1418_v58 }
 0x3e7   :  { %1494 = vst [vmem:[#allocation2 + $0x158] sm:$0xff] %v1420_v22  ;;  %v1423_v40 = vpop.f32.mrb[76].mxu0 }
 0x3e8   :  { %v1424_v10 = vadd.f32 %v1423_v40, %v2643_v37  ;;  %v1425_v61 = vpop.f32.mrb[77].mxu0 }
 0x3e9   :  { %v1426_v63 = vadd.f32 %v1425_v61, %v2643_v37 }
 0x3ea   :  { %1495 = vst [vmem:[#allocation2 + $0x160] sm:$0xff] %v1424_v10 }
 0x3eb   :  { %1496 = vst [vmem:[#allocation2 + $0x168] sm:$0xff] %v1426_v63  ;;  %v1429_v11 = vpop.f32.mrb[78].mxu0 }
 0x3ec   :  { %v1430_v17 = vadd.f32 %v1429_v11, %v2647_v55  ;;  %v1431_v8 = vpop.f32.mrb[79].mxu0 }
 0x3ed   :  { %v1432_v0 = vadd.f32 %v1431_v8, %v2647_v55  ;;  %v2939_v55 = vld [vmem:[#allocation32_spill] sm:$0xff] }
 0x3ee   :  { %1497 = vst [vmem:[#allocation2 + $0x170] sm:$0xff] %v1430_v17 }
 0x3ef   :  { %1498 = vst [vmem:[#allocation2 + $0x178] sm:$0xff] %v1432_v0  ;;  %v1435_v41 = vpop.f32.mrb[80].mxu0 }
 0x3f0   :  { %v1436_v2 = vadd.f32 %v1435_v41, %v2651_v13  ;;  %v1437_v12 = vpop.f32.mrb[81].mxu0 }
 0x3f1   :  { %v1438_v29 = vadd.f32 %v1437_v12, %v2651_v13  ;;  %v2940_v13 = vld [vmem:[#allocation33_spill] sm:$0xff] }
 0x3f2   :  { %1499 = vst [vmem:[#allocation2 + $0x180] sm:$0xff] %v1436_v2 }
 0x3f3   :  { %1500 = vst [vmem:[#allocation2 + $0x188] sm:$0xff] %v1438_v29  ;;  %v1441_v46 = vpop.f32.mrb[82].mxu0 }
 0x3f4   :  { %v1442_v37 = vadd.f32 %v1441_v46, %v2655_v19  ;;  %v1443_v14 = vpop.f32.mrb[83].mxu0 }
 0x3f5   :  { %v1444_v52 = vadd.f32 %v1443_v14, %v2655_v19  ;;  %v2941_v19 = vld [vmem:[#allocation34_spill] sm:$0xff] }
 0x3f6   :  { %1501 = vst [vmem:[#allocation2 + $0x190] sm:$0xff] %v1442_v37 }
 0x3f7   :  { %1502 = vst [vmem:[#allocation2 + $0x198] sm:$0xff] %v1444_v52  ;;  %v1447_v48 = vpop.f32.mrb[84].mxu0 }
 0x3f8   :  { %v1448_v33 = vadd.f32 %v1447_v48, %v2939_v55  ;;  %v1449_v4 = vpop.f32.mrb[85].mxu0 }
 0x3f9   :  { %v1450_v9 = vadd.f32 %v1449_v4, %v2939_v55 }
 0x3fa   :  { %1503 = vst [vmem:[#allocation2 + $0x1a0] sm:$0xff] %v1448_v33 }
 0x3fb   :  { %1504 = vst [vmem:[#allocation2 + $0x1a8] sm:$0xff] %v1450_v9  ;;  %v1453_v59 = vpop.f32.mrb[86].mxu0 }
 0x3fc   :  { %v1454_v36 = vadd.f32 %v1453_v59, %v2940_v13  ;;  %v1455_v57 = vpop.f32.mrb[87].mxu0 }
 0x3fd   :  { %v1456_v51 = vadd.f32 %v1455_v57, %v2940_v13 }
 0x3fe   :  { %1505 = vst [vmem:[#allocation2 + $0x1b0] sm:$0xff] %v1454_v36 }
 0x3ff   :  { %1506 = vst [vmem:[#allocation2 + $0x1b8] sm:$0xff] %v1456_v51  ;;  %v1459_v60 = vpop.f32.mrb[88].mxu0 }
 0x400   :  { %v1460_v47 = vadd.f32 %v1459_v60, %v2941_v19  ;;  %v1461_v26 = vpop.f32.mrb[89].mxu0 }
 0x401   :  { %v1462_v3 = vadd.f32 %v1461_v26, %v2941_v19 }
 0x402   :  { %1507 = vst [vmem:[#allocation2 + $0x1c0] sm:$0xff] %v1460_v47 }
 0x403   :  { %1508 = vst [vmem:[#allocation2 + $0x1c8] sm:$0xff] %v1462_v3  ;;  %v1465_v24 = vpop.f32.mrb[90].mxu0 }
 0x404   :  { %v1466_v23 = vadd.f32 %v1465_v24, %v2942_v56  ;;  %v1467_v35 = vpop.f32.mrb[91].mxu0 }
 0x405   :  { %v1468_v62 = vadd.f32 %v1467_v35, %v2942_v56 }
 0x406   :  { %1509 = vst [vmem:[#allocation2 + $0x1d0] sm:$0xff] %v1466_v23 }
 0x407   :  { %1510 = vst [vmem:[#allocation2 + $0x1d8] sm:$0xff] %v1468_v62  ;;  %v1471_v31 = vpop.f32.mrb[92].mxu0 }
 0x408   :  { %v1472_v15 = vadd.f32 %v1471_v31, %v2943_v54  ;;  %v1473_v38 = vpop.f32.mrb[93].mxu0 }
 0x409   :  { %v1474_v39 = vadd.f32 %v1473_v38, %v2943_v54 }
 0x40a   :  { %1511 = vst [vmem:[#allocation2 + $0x1e0] sm:$0xff] %v1472_v15 }
 0x40b   :  { %1512 = vst [vmem:[#allocation2 + $0x1e8] sm:$0xff] %v1474_v39  ;;  %v1477_v50 = vpop.f32.mrb[94].mxu0 }
 0x40c   :  { %v1478_v45 = vadd.f32 %v1477_v50, %v2944_v7  ;;  %v1479_v18 = vpop.f32.mrb[95].mxu0 }
 0x40d   :  { %v1480_v44 = vadd.f32 %v1479_v18, %v2944_v7 }
 0x40e   :  { %1513 = vst [vmem:[#allocation2 + $0x1f0] sm:$0xff] %v1478_v45 }
 0x40f   :  { %1514 = vst [vmem:[#allocation2 + $0x1f8] sm:$0xff] %v1480_v44 }
 0x410   :  { %1756 = shalt.err (!%p1753_p4)
}
 0x411   :  { %s1757_s27 = scalar_lea.hbm %s2827_s5, 8192 }
 0x412   :  { %p1758_p5 = scmp.ne.s32.totalorder %s2827_s5, %s1757_s27  ;;  %p1761_p6 = scmp.lt.u32.totalorder %s1757_s27, %s2827_s5 }
 0x414   :  { %p1763_p7 = pnand %p1761_p6, %p1758_p5 }
 0x416   :  { %1766 = shalt.err (!%p1763_p7)
}
 0x417   :  { %s1772_s7 = smov 256   ;;  %s1773_s8 = smov 16  }
 0x418   :  { %1526 = dma.vmem_to_hbm [thread:$0]  %s1521_s23, 8192, %s2827_s5, [#allocation3], %s1772_s7, %s1772_s7, %s1773_s8  }
 0x419   :  { %1767 = dma.done.wait [#allocation3], 8192  }
 0x41a   :  { %1768 = vsyncadd [#allocation3], 4294959104 }
 0x41b   :  { %1530 = vsyncpa [#allocation3], 1 }

</bundles_post_ra>
